<compile_context>
chip_gen: v6e
topology: v6e:2x2x1
jax: 0.10.0
libtpu: 0.0.40
codegen_flags: <defaults>
</compile_context>

<pallas_src>
import jax
import jax.numpy as jnp
from jax.experimental import pallas as pl
from jax.experimental.pallas import tpu as pltpu

# Layer sizes taken from the PyTorch module's __init__.
SIZES = [1, 30, 100, 1100, 10, 1]

HID3_PAD = 1152                    # 1100 padded up to 9 * 128 (lane aligned)


def _mlp_kernel(x_ref,
                w1_ref, b1_ref,        # (1, 30),     (1, 30)
                w2_ref, b2_ref,        # (30, 100),   (1, 100)
                w3_ref, b3_ref,        # (100, 1152), (1, 1152)   zero-padded
                w4_ref, b4_ref,        # (1152, 10),  (1, 10)     zero-padded
                w5_ref, b5_ref,        # (1, 10) row (W5^T), (1, 1)
                o_ref):
    """Fused forward pass: VPU layer 1, MXU layers 2-4, VPU reduce layer 5."""
    # ---- Layer 1: K = 1 contraction -> pure VPU broadcast (no MXU). ----
    h = jnp.maximum(x_ref[...] * w1_ref[...] + b1_ref[...], 0.0)        # (N, 30)

    # ---- Layer 2: (N, 30) @ (30, 100) on the MXU. ----
    h = jnp.dot(h, w2_ref[...], preferred_element_type=jnp.float32) + b2_ref[...]
    h = jnp.maximum(h, 0.0)                                             # (N, 100)

    # ---- Layer 3: (N, 100) @ (100, 1152), one full MXU matmul. ----
    # The (N, 1152) intermediate (~553 KB at N=120) stays in VMEM.
    h3 = jnp.dot(h, w3_ref[...], preferred_element_type=jnp.float32) + b3_ref[...]
    h3 = jnp.maximum(h3, 0.0)                                           # (N, 1152)

    # ---- Layer 4: (N, 1152) @ (1152, 10), one full MXU matmul. ----
    h4 = jnp.dot(h3, w4_ref[...], preferred_element_type=jnp.float32) + b4_ref[...]
    h4 = jnp.maximum(h4, 0.0)                                           # (N, 10)

    # ---- Layer 5: output width 1 -> VPU multiply + lane reduce (no MXU). ----
    o = jnp.sum(h4 * w5_ref[...], axis=-1, keepdims=True) + b5_ref[...]  # (N, 1)
    o_ref[...] = o.astype(o_ref.dtype)


def complex_polynomial_model(x, kernel_params):
    """Forward pass.

    x: (N, 1) f32.
    kernel_params: the flat, already-padded tuple produced by
      `prepare_kernel_params()` (do NOT pass raw params here — padding in the
      forward path is exactly the per-call overhead we removed).
    """
    n = x.shape[0]
    vmem_spec = pl.BlockSpec(memory_space=pltpu.MemorySpace.VMEM)
    flat_args = (x,) + tuple(kernel_params)

    # flops: 2*N*(1*30 + 30*100 + 100*1100 + 1100*10 + 10*1)
    flops = 2 * n * (30 + 3000 + 110000 + 11000 + 10)
    bytes_accessed = 4 * (n * 2 + 60 + 30 * 100 + 100 + 100 * HID3_PAD
                          + HID3_PAD + HID3_PAD * 10 + 10 + 10 + 1)

    return pl.pallas_call(
        _mlp_kernel,
        out_shape=jax.ShapeDtypeStruct((n, SIZES[-1]), jnp.float32),
        in_specs=[vmem_spec] * len(flat_args),
        out_specs=vmem_spec,
        compiler_params=pltpu.CompilerParams(vmem_limit_bytes=4 << 20),
        cost_estimate=pl.CostEstimate(flops=flops, transcendentals=0,
                                      bytes_accessed=bytes_accessed),
    )(*flat_args)


def init_params(key):
    """Deterministic init mimicking torch.nn.Linear's U(-1/sqrt(fan_in), ...).

    Returns the *logical* params: list of (W, b) with W (in, out), b (1, out).
    """
    params = []
    for i in range(len(SIZES) - 1):
        fan_in, fan_out = SIZES[i], SIZES[i + 1]
        key, kw, kb = jax.random.split(key, 3)
        bound = 1.0 / jnp.sqrt(jnp.float32(fan_in))
        w = jax.random.uniform(kw, (fan_in, fan_out), jnp.float32, -bound, bound)
        b = jax.random.uniform(kb, (1, fan_out), jnp.float32, -bound, bound)
        params.append((w, b))
    return params


def prepare_kernel_params(params):
    """One-time conversion of logical params into the kernel's layout.

    Pads layers 3/4 along the 1100-wide dim to 1152 (zeros are exact: they
    relu to 0 and the padded w4 rows are 0) and pre-transposes w5 to a (1, 10)
    row.  Call this ONCE (e.g. after init / after each optimizer step), not
    inside the forward path.
    """
    (w1, b1), (w2, b2), (w3, b3), (w4, b4), (w5, b5) = params
    pad3 = HID3_PAD - SIZES[3]
    w3p = jnp.pad(w3, ((0, 0), (0, pad3)))
    b3p = jnp.pad(b3, ((0, 0), (0, pad3)))
    w4p = jnp.pad(w4, ((0, pad3), (0, 0)))
    w5_row = w5.T                                   # (1, 10)
    kernel_params = (w1, b1, w2, b2, w3p, b3p, w4p, b4, w5_row, b5)
    return jax.tree_util.tree_map(jax.block_until_ready, kernel_params)


def reference_forward(x, params):
    """Pure-JAX reference of the same forward pass (for a sanity check)."""
    h = x
    for i, (w, b) in enumerate(params):
        h = h @ w + b
        if i < len(params) - 1:
            h = jnp.maximum(h, 0.0)
    return h


if __name__ == "__main__":
    key = jax.random.PRNGKey(0)
    params = init_params(key)

    # Padding / transposition happens here, once — outside the forward path.
    kernel_params = prepare_kernel_params(params)

    # Same input the script builds: linspace(-5, 5, 120).unsqueeze(1).
    x = jnp.linspace(-5.0, 5.0, 120, dtype=jnp.float32).reshape(120, 1)

    out = complex_polynomial_model(x, kernel_params)
    out = jax.block_until_ready(out)

    ref = reference_forward(x, params)
    assert out.shape == (120, 1)
    assert jnp.allclose(out, ref, atol=1e-4, rtol=1e-4), "mismatch vs JAX reference"

    print("KERNEL_OK")
</pallas_src>

<mosaic_0001>
module attributes {stable_mosaic.version = 11 : i64} {
  func.func @_mlp_kernel(%arg0: memref<120x1xf32, #tpu.memory_space<vmem>>, %arg1: memref<1x30xf32, #tpu.memory_space<vmem>>, %arg2: memref<1x30xf32, #tpu.memory_space<vmem>>, %arg3: memref<30x100xf32, #tpu.memory_space<vmem>>, %arg4: memref<1x100xf32, #tpu.memory_space<vmem>>, %arg5: memref<100x1152xf32, #tpu.memory_space<vmem>>, %arg6: memref<1x1152xf32, #tpu.memory_space<vmem>>, %arg7: memref<1152x10xf32, #tpu.memory_space<vmem>>, %arg8: memref<1x10xf32, #tpu.memory_space<vmem>>, %arg9: memref<1x10xf32, #tpu.memory_space<vmem>>, %arg10: memref<1x1xf32, #tpu.memory_space<vmem>>, %arg11: memref<120x1xf32, #tpu.memory_space<vmem>>) attributes {dimension_semantics = [], scalar_prefetch = 0 : i64, scratch_operands = 0 : i64, tpu.core_type = #tpu.core_type<tc>} {
    %c0 = arith.constant 0 : index
    %c0_0 = arith.constant 0 : index
    %0 = vector.load %arg0[%c0, %c0_0] : memref<120x1xf32, #tpu.memory_space<vmem>>, vector<120x1xf32>
    %c0_1 = arith.constant 0 : index
    %c0_2 = arith.constant 0 : index
    %1 = vector.load %arg1[%c0_1, %c0_2] : memref<1x30xf32, #tpu.memory_space<vmem>>, vector<1x30xf32>
    %2 = vector.broadcast %0 : vector<120x1xf32> to vector<120x30xf32>
    %3 = vector.broadcast %1 : vector<1x30xf32> to vector<120x30xf32>
    %4 = arith.mulf %2, %3 : vector<120x30xf32>
    %c0_3 = arith.constant 0 : index
    %c0_4 = arith.constant 0 : index
    %5 = vector.load %arg2[%c0_3, %c0_4] : memref<1x30xf32, #tpu.memory_space<vmem>>, vector<1x30xf32>
    %6 = vector.broadcast %5 : vector<1x30xf32> to vector<120x30xf32>
    %7 = arith.addf %4, %6 : vector<120x30xf32>
    %cst = arith.constant 0.000000e+00 : f32
    %8 = vector.broadcast %cst : f32 to vector<120x30xf32>
    %9 = arith.maximumf %7, %8 : vector<120x30xf32>
    %c0_5 = arith.constant 0 : index
    %c0_6 = arith.constant 0 : index
    %10 = vector.load %arg3[%c0_5, %c0_6] : memref<30x100xf32, #tpu.memory_space<vmem>>, vector<30x100xf32>
    %cst_7 = arith.constant dense<0.000000e+00> : vector<120x100xf32>
    %11 = tpu.matmul %9, %10, %cst_7 {dimension_numbers = #tpu.dot_dimension_numbers<[1], [0], [0], [1], [0, 0, 1, 1], [], []>} : vector<120x30xf32>, vector<30x100xf32>, vector<120x100xf32> -> vector<120x100xf32>
    %c0_8 = arith.constant 0 : index
    %c0_9 = arith.constant 0 : index
    %12 = vector.load %arg4[%c0_8, %c0_9] : memref<1x100xf32, #tpu.memory_space<vmem>>, vector<1x100xf32>
    %13 = vector.broadcast %12 : vector<1x100xf32> to vector<120x100xf32>
    %14 = arith.addf %11, %13 : vector<120x100xf32>
    %cst_10 = arith.constant 0.000000e+00 : f32
    %15 = vector.broadcast %cst_10 : f32 to vector<120x100xf32>
    %16 = arith.maximumf %14, %15 : vector<120x100xf32>
    %c0_11 = arith.constant 0 : index
    %c0_12 = arith.constant 0 : index
    %17 = vector.load %arg5[%c0_11, %c0_12] : memref<100x1152xf32, #tpu.memory_space<vmem>>, vector<100x1152xf32>
    %cst_13 = arith.constant dense<0.000000e+00> : vector<120x1152xf32>
    %18 = tpu.matmul %16, %17, %cst_13 {dimension_numbers = #tpu.dot_dimension_numbers<[1], [0], [0], [1], [0, 0, 1, 1], [], []>} : vector<120x100xf32>, vector<100x1152xf32>, vector<120x1152xf32> -> vector<120x1152xf32>
    %c0_14 = arith.constant 0 : index
    %c0_15 = arith.constant 0 : index
    %19 = vector.load %arg6[%c0_14, %c0_15] : memref<1x1152xf32, #tpu.memory_space<vmem>>, vector<1x1152xf32>
    %20 = vector.broadcast %19 : vector<1x1152xf32> to vector<120x1152xf32>
    %21 = arith.addf %18, %20 : vector<120x1152xf32>
    %cst_16 = arith.constant 0.000000e+00 : f32
    %22 = vector.broadcast %cst_16 : f32 to vector<120x1152xf32>
    %23 = arith.maximumf %21, %22 : vector<120x1152xf32>
    %c0_17 = arith.constant 0 : index
    %c0_18 = arith.constant 0 : index
    %24 = vector.load %arg7[%c0_17, %c0_18] : memref<1152x10xf32, #tpu.memory_space<vmem>>, vector<1152x10xf32>
    %cst_19 = arith.constant dense<0.000000e+00> : vector<120x10xf32>
    %25 = tpu.matmul %23, %24, %cst_19 {dimension_numbers = #tpu.dot_dimension_numbers<[1], [0], [0], [1], [0, 0, 1, 1], [], []>} : vector<120x1152xf32>, vector<1152x10xf32>, vector<120x10xf32> -> vector<120x10xf32>
    %c0_20 = arith.constant 0 : index
    %c0_21 = arith.constant 0 : index
    %26 = vector.load %arg8[%c0_20, %c0_21] : memref<1x10xf32, #tpu.memory_space<vmem>>, vector<1x10xf32>
    %27 = vector.broadcast %26 : vector<1x10xf32> to vector<120x10xf32>
    %28 = arith.addf %25, %27 : vector<120x10xf32>
    %cst_22 = arith.constant 0.000000e+00 : f32
    %29 = vector.broadcast %cst_22 : f32 to vector<120x10xf32>
    %30 = arith.maximumf %28, %29 : vector<120x10xf32>
    %c0_23 = arith.constant 0 : index
    %c0_24 = arith.constant 0 : index
    %31 = vector.load %arg9[%c0_23, %c0_24] : memref<1x10xf32, #tpu.memory_space<vmem>>, vector<1x10xf32>
    %32 = vector.broadcast %31 : vector<1x10xf32> to vector<120x10xf32>
    %33 = arith.mulf %30, %32 : vector<120x10xf32>
    %cst_25 = arith.constant dense<0.000000e+00> : vector<120xf32>
    %34 = vector.multi_reduction <add>, %33, %cst_25 [1] : vector<120x10xf32> to vector<120xf32>
    %35 = vector.shape_cast %34 : vector<120xf32> to vector<120x1xf32>
    %c0_26 = arith.constant 0 : index
    %c0_27 = arith.constant 0 : index
    %36 = vector.load %arg10[%c0_26, %c0_27] : memref<1x1xf32, #tpu.memory_space<vmem>>, vector<1x1xf32>
    %37 = vector.broadcast %36 : vector<1x1xf32> to vector<120x1xf32>
    %38 = arith.addf %35, %37 : vector<120x1xf32>
    %c0_28 = arith.constant 0 : index
    %c0_29 = arith.constant 0 : index
    %39 = vector.load %arg11[%c0_28, %c0_29] : memref<120x1xf32, #tpu.memory_space<vmem>>, vector<120x1xf32>
    tpu.vector_store %arg11[%c0_28, %c0_29], %38 {strides = array<i32>} : memref<120x1xf32, #tpu.memory_space<vmem>>, vector<120x1xf32>,
    return
  }
}

</mosaic_0001>

<bundles_post_ra>
// kernel: tpu_custom_call.1
= control target key start
LH: loop header
LB: loop body
LE: loop exit
PB: predicated region body
PF: predicated region fallthrough
CT: control target
= control target key end

     0   :  { %v3223_v0 = vmov 0   ;;  %v3224_v5 = vmov 0.0   ;;  %vm3225_vm0 = vmmov 0   ;;  %vm246_vm1 = vcmask 1045504   ;;  %s5147_s0 = inlined_call_operand.vmem [shape: f32[120,1], index: 0, kind: input, shape index: {}]   ;;  %s5148_s3 = inlined_call_operand.vmem [shape: f32[30,100], index: 3, kind: input, shape index: {}]   ;;  %s5149_s5 = inlined_call_operand.vmem [shape: f32[100,1152], index: 5, kind: input, shape index: {}]   ;;  %s5150_s1 = inlined_call_operand.vmem [shape: f32[1,30], index: 1, kind: input, shape index: {}]   ;;  %s5151_s2 = inlined_call_operand.vmem [shape: f32[1,30], index: 2, kind: input, shape index: {}]   ;;  %s5152_s4 = inlined_call_operand.vmem [shape: f32[1,100], index: 4, kind: input, shape index: {}]   ;;  %s5153_s7 = inlined_call_operand.vmem [shape: f32[1152,10], index: 7, kind: input, shape index: {}]   ;;  %s5154_s6 = inlined_call_operand.vmem [shape: f32[1,1152], index: 6, kind: input, shape index: {}]   ;;  %s5155_s10 = inlined_call_operand.<no memory space> [shape: f32[1,1], index: 10, kind: input, shape index: {}]   ;;  %s5156_s8 = inlined_call_operand.vmem [shape: f32[1,10], index: 8, kind: input, shape index: {}]   ;;  %s5157_s9 = inlined_call_operand.vmem [shape: f32[1,10], index: 9, kind: input, shape index: {}]   ;;  %s5158_s11 = inlined_call_operand.vmem [shape: f32[120,1], index: 11, kind: output, shape index: {}]  }
   0x1   :  { %3222 = vset.pattern.permute.xlu1 %v3223_v0  ;;  %3221 = vset.pattern.permute.xlu0 %v3223_v0  ;;  %v42_v1 = vld [vmem:[%s5147_s0 + $0x10] sm:$0xff]  ;;  %v40_v2 = vld [vmem:[%s5147_s0] sm:$0xff]  ;;  %v43_v3 = vld [vmem:[%s5147_s0 + $0x18] sm:$0xff]  ;;  %vm617_vm2 = vcmask 1043456   ;;  %vm200_vm3 = vcmask 244736   ;;  %vm571_vm4 = vcmask 818176  }
   0x2   :  { %68 = vperm.xlu1 %3222, %v42_v1   ;;  %58 = vperm.xlu0 %3221, %v40_v2   ;;  %v41_v4 = vld [vmem:[%s5147_s0 + $0x8] sm:$0xff]  ;;  %v192_v6 = vld [vmem:[%s5148_s3 + $0x18] sm:$0x3f]  ;;  %v44_v8 = vld [vmem:[%s5147_s0 + $0x20] sm:$0xff]  ;;  %vm2428_vm5 = vcmask 80896   ;;  %vm2496_vm6 = vcmask 7168  }
   0x3   :  { %3009 = vmatprep.subr.mxu0 %v3224_v5  ;;  %3017 = vmatprep.mubr.msk.f32.mxu0 %vm3225_vm0, %v3224_v5  ;;  %v45_v7 = vld [vmem:[%s5147_s0 + $0x28] sm:$0xff]  ;;  %v191_v9 = vld [vmem:[%s5148_s3 + $0x10] sm:$0xff]  ;;  %v47_v11 = vld [vmem:[%s5147_s0 + $0x38] sm:$0xff] }
   0x4   :  { %3210 = vmatprep.subr.mxu1 %v3224_v5  ;;  %3038 = vmatprep.mubr.msk.f32.mxu1 %vm3225_vm0, %v3224_v5  ;;  %v190_v10 = vld [vmem:[%s5148_s3 + $0x8] sm:$0xff]  ;;  %v46_v12 = vld [vmem:[%s5147_s0 + $0x30] sm:$0xff]  ;;  %v189_v13 = vld [vmem:[%s5148_s3] sm:$0xff] }
   0x5   :  { %3010 = vmatpush3.msk.msra.mxu0 %vm246_vm1, %v192_v6  ;;  %3214 = vmatpush3.msk.msra.mxu1 %vm246_vm1, %v192_v6  ;;  %v49_v14 = vld [vmem:[%s5147_s0 + $0x48] sm:$0xff]  ;;  %v48_v15 = vld [vmem:[%s5147_s0 + $0x40] sm:$0xff]  ;;  %v51_v16 = vld [vmem:[%s5147_s0 + $0x58] sm:$0xff] }
   0x6   :  { %73 = vperm.xlu1 %3222, %v43_v3   ;;  %63 = vperm.xlu0 %3221, %v41_v4   ;;  %v50_v17 = vld [vmem:[%s5147_s0 + $0x50] sm:$0xff]  ;;  %v53_v18 = vld [vmem:[%s5147_s0 + $0x68] sm:$0xff]  ;;  %v52_v19 = vld [vmem:[%s5147_s0 + $0x60] sm:$0xff] }
   0x7   :  { %3011 = vmatprep.subr.mxu0 %v3224_v5  ;;  %3211 = vmatprep.subr.mxu1 %v3224_v5  ;;  %v54_v20 = vld [vmem:[%s5147_s0 + $0x70] sm:$0xff]  ;;  %v514_v21 = vld [vmem:[%s5149_s5 + $0x368] sm:$0xf]  ;;  %v516_v22 = vld [vmem:[%s5149_s5 + $0x378] sm:$0xf] }
   0x8   :  { %3012 = vmatpush3.msra.mxu0 %v191_v9  ;;  %3215 = vmatpush3.msra.mxu1 %v191_v9  ;;  %v3366_v23 = vld [vmem:[%s5150_s1] ss:$0 sm:$0xff]  ;;  %v515_v34 = vld [vmem:[%s5149_s5 + $0x370] sm:$0xf]  ;;  %v506_v38 = vld [vmem:[%s5149_s5 + $0x328] sm:$0xff] }
   0x9   :  { %3013 = vmatprep.subr.mxu0 %v3224_v5  ;;  %3212 = vmatprep.subr.mxu1 %v3224_v5  ;;  %v3371_v24 = vld [vmem:[%s5151_s2] ss:$0 sm:$0xff]  ;;  %v507_v35 = vld [vmem:[%s5149_s5 + $0x330] sm:$0xff]  ;;  %v498_v41 = vld [vmem:[%s5149_s5 + $0x2e8] sm:$0xff] }
   0xa   :  { %83 = vperm.xlu1 %3222, %v45_v7   ;;  %78 = vperm.xlu0 %3221, %v44_v8   ;;  %v497_v44 = vld [vmem:[%s5149_s5 + $0x2e0] sm:$0xff]  ;;  %v488_v47 = vld [vmem:[%s5149_s5 + $0x298] sm:$0xff]  ;;  %v479_v54 = vld [vmem:[%s5149_s5 + $0x250] sm:$0xff] }
   0xb   :  { %3014 = vmatpush3.msra.mxu0 %v190_v10  ;;  %3216 = vmatpush3.msra.mxu1 %v190_v10  ;;  %v489_v45 = vld [vmem:[%s5149_s5 + $0x2a0] sm:$0xff]  ;;  %v480_v51 = vld [vmem:[%s5149_s5 + $0x258] sm:$0xff]  ;;  %v471_v55 = vld [vmem:[%s5149_s5 + $0x210] sm:$0xff] }
   0xc   :  { %3015 = vmatprep.subr.mxu0 %v3224_v5  ;;  %3213 = vmatprep.subr.mxu1 %v3224_v5  ;;  %v470_v57 = vld [vmem:[%s5149_s5 + $0x208] sm:$0xff]  ;;  %v513_v2 = vld [vmem:[%s5149_s5 + $0x360] sm:$0xf] }
   0xd   :  { %3016 = vmatpush3.msra.mxu0 %v189_v13  ;;  %3217 = vmatpush3.msra.mxu1 %v189_v13  ;;  %v462_v3 = vld [vmem:[%s5149_s5 + $0x1c8] sm:$0xff]  ;;  %v505_v6 = vld [vmem:[%s5149_s5 + $0x320] sm:$0xff] }
   0xe   :  { %93 = vperm.xlu1 %3222, %v47_v11   ;;  %88 = vperm.xlu0 %3221, %v46_v12   ;;  %v461_v7 = vld [vmem:[%s5149_s5 + $0x1c0] sm:$0xff] }
   0xf   :  { %2536 = vmatprep.subr.msk.mxu1 %vm617_vm2, %v514_v21  ;;  %2553 = vmatprep.subr.msk.mxu0 %vm617_vm2, %v516_v22 }
  0x12   :  { %103 = vperm.xlu1 %3222, %v49_v14   ;;  %98 = vperm.xlu0 %3221, %v48_v15  }
  0x16   :  { %113 = vperm.xlu1 %3222, %v51_v16   ;;  %108 = vperm.xlu0 %3221, %v50_v17   ;;  %v504_v16 = vld [vmem:[%s5149_s5 + $0x318] sm:$0xff]  ;;  %v453_v17 = vld [vmem:[%s5149_s5 + $0x180] sm:$0xff] }
  0x1a   :  { %123 = vperm.xlu1 %3222, %v53_v18   ;;  %118 = vperm.xlu0 %3221, %v52_v19   ;;  %v496_v18 = vld [vmem:[%s5149_s5 + $0x2d8] sm:$0xff] }
  0x1b   :  { %v452_v19 = vld [vmem:[%s5149_s5 + $0x178] sm:$0xff] }
  0x1e   :  { %128 = vperm.xlu0 %3221, %v54_v20  }
  0x7d   :  { %v69_v25 = vpop.permute.xlu1 %68  ;;  %v59_v26 = vpop.permute.xlu0 %58 }
  0x7e   :  { %v137_v27 = vmul.f32 %v3366_v23, %v59_v26  ;;  %v139_v28 = vmul.f32 %v3366_v23, %v69_v25 }
  0x80   :  { %v159_v29 = vadd.f32 %v3371_v24, %v137_v27  ;;  %v161_v36 = vadd.f32 %v3371_v24, %v139_v28  ;;  %v495_v28 = vld [vmem:[%s5149_s5 + $0x2d0] sm:$0xff] }
  0x81   :  { %v74_v30 = vpop.permute.xlu1 %73  ;;  %v64_v31 = vpop.permute.xlu0 %63 }
  0x82   :  { %v174_v32 = vmax.f32 %v159_v29, 0.0  ;;  %v138_v33 = vmul.f32 %v3366_v23, %v64_v31  ;;  %v140_v42 = vmul.f32 %v3366_v23, %v74_v30  ;;  %v176_v46 = vmax.f32 %v161_v36, 0.0  ;;  %v444_v29 = vld [vmem:[%s5149_s5 + $0x138] sm:$0xff]  ;;  %v487_v30 = vld [vmem:[%s5149_s5 + $0x290] sm:$0xff]  ;;  %v486_v36 = vld [vmem:[%s5149_s5 + $0x288] sm:$0xff] }
  0x83   :  { %v443_v31 = vld [vmem:[%s5149_s5 + $0x130] sm:$0xff] }
  0x84   :  { %v160_v37 = vadd.f32 %v3371_v24, %v138_v33  ;;  %3018 = vmatmul.mubr.msk.f32.vlgmr.msra.gmra.mxu0 %vm200_vm3, %v174_v32  ;;  %v162_v52 = vadd.f32 %v3371_v24, %v140_v42  ;;  %v469_v42 = vld [vmem:[%s5149_s5 + $0x200] sm:$0xff] }
  0x85   :  { %v84_v39 = vpop.permute.xlu1 %83  ;;  %v79_v40 = vpop.permute.xlu0 %78  ;;  %3020 = vmatprep.mubr.msk.f32.mxu0 %vm3225_vm0, %v3224_v5  ;;  %2554 = vmatpush1.msk.msra.mxu0 %vm617_vm2, %v515_v34 }
  0x86   :  { %v175_v43 = vmax.f32 %v160_v37, 0.0  ;;  %808 = vmatprep.subr.mxu0 %v507_v35  ;;  %v141_v48 = vmul.f32 %v3366_v23, %v79_v40  ;;  %v142_v58 = vmul.f32 %v3366_v23, %v84_v39  ;;  %v177_v62 = vmax.f32 %v162_v52, 0.0  ;;  %v435_v39 = vld [vmem:[%s5149_s5 + $0xf0] sm:$0xff]  ;;  %v477_v40 = vld [vmem:[%s5149_s5 + $0x240] sm:$0xff] }
  0x87   :  { %809 = vmatpush1.msra.mxu0 %v506_v38  ;;  %v478_v38 = vld [vmem:[%s5149_s5 + $0x248] sm:$0xff] }
  0x88   :  { %3021 = vmatmul.mubr.msk.f32.gmra.mxu0 %vm200_vm3, %v175_v43  ;;  %810 = vmatprep.subr.mxu0 %v498_v41  ;;  %v163_v59 = vadd.f32 %v3371_v24, %v141_v48  ;;  %v164_v8 = vadd.f32 %v3371_v24, %v142_v58  ;;  %v434_v41 = vld [vmem:[%s5149_s5 + $0xe8] sm:$0xff]  ;;  %v460_v48 = vld [vmem:[%s5149_s5 + $0x1b8] sm:$0xff] }
  0x89   :  { %v94_v49 = vpop.permute.xlu1 %93  ;;  %v89_v50 = vpop.permute.xlu0 %88  ;;  %3023 = vmatprep.mubr.msk.f32.mxu0 %vm3225_vm0, %v3224_v5  ;;  %811 = vmatpush1.msra.mxu0 %v497_v44 }
  0x8a   :  { %v144_v53 = vmul.f32 %v3366_v23, %v94_v49  ;;  %812 = vmatprep.subr.mxu0 %v489_v45  ;;  %v178_v9 = vmax.f32 %v163_v59, 0.0  ;;  %v143_v11 = vmul.f32 %v3366_v23, %v89_v50  ;;  %v179_v20 = vmax.f32 %v164_v8, 0.0  ;;  %v426_v49 = vld [vmem:[%s5149_s5 + $0xa8] sm:$0xff]  ;;  %v459_v50 = vld [vmem:[%s5149_s5 + $0x1b0] sm:$0xff] }
  0x8b   :  { %813 = vmatpush1.msra.mxu0 %v488_v47  ;;  %v407_v8 = vld [vmem:[%s5149_s5 + $0x10] sm:$0xff] }
  0x8c   :  { %v166_v56 = vadd.f32 %v3371_v24, %v144_v53  ;;  %3024 = vmatmul.mubr.msk.f32.gmra.mxu0 %vm200_vm3, %v176_v46  ;;  %814 = vmatprep.subr.mxu0 %v480_v51  ;;  %v165_v21 = vadd.f32 %v3371_v24, %v143_v11  ;;  %v468_v46 = vld [vmem:[%s5149_s5 + $0x1f8] sm:$0xff]  ;;  %v451_v51 = vld [vmem:[%s5149_s5 + $0x170] sm:$0xff]  ;;  %v3609_v11 = vld [vmem:[%s5152_s4] ss:$0 sm:$0xff] }
  0x8d   :  { %v104_v60 = vpop.permute.xlu1 %103  ;;  %v99_v61 = vpop.permute.xlu0 %98  ;;  %3026 = vmatprep.mubr.msk.f32.mxu0 %vm3225_vm0, %v3224_v5  ;;  %815 = vmatpush1.msra.mxu0 %v479_v54 }
  0x8e   :  { %v181_v63 = vmax.f32 %v166_v56, 0.0  ;;  %v146_v0 = vmul.f32 %v3366_v23, %v104_v60  ;;  %v145_v1 = vmul.f32 %v3366_v23, %v99_v61  ;;  %816 = vmatprep.subr.mxu0 %v471_v55  ;;  %v180_v32 = vmax.f32 %v165_v21, 0.0  ;;  %v450_v55 = vld [vmem:[%s5149_s5 + $0x168] sm:$0xff]  ;;  %v432_v60 = vld [vmem:[%s5149_s5 + $0xd8] sm:$0xff]  ;;  %v519_v21 = vld [vmem:[%s5149_s5 + $0x390] sm:$0xf] }
  0x8f   :  { %817 = vmatpush1.msra.mxu0 %v470_v57  ;;  %v442_v56 = vld [vmem:[%s5149_s5 + $0x128] sm:$0xff]  ;;  %v433_v57 = vld [vmem:[%s5149_s5 + $0xe0] sm:$0xff]  ;;  %v424_v61 = vld [vmem:[%s5149_s5 + $0x98] sm:$0xff] }
  0x90   :  { %v167_v4 = vadd.f32 %v3371_v24, %v145_v1  ;;  %3027 = vmatmul.mubr.msk.f32.gmra.mxu0 %vm200_vm3, %v177_v62  ;;  %3039 = vmatmul.mubr.msk.f32.vlgmr.msra.gmra.mxu1 %vm200_vm3, %v181_v63  ;;  %v168_v12 = vadd.f32 %v3371_v24, %v146_v0  ;;  %v423_v62 = vld [vmem:[%s5149_s5 + $0x90] sm:$0xff]  ;;  %v425_v63 = vld [vmem:[%s5149_s5 + $0xa0] sm:$0xff] }
  0x91   :  { %v109_v10 = vpop.permute.xlu0 %108  ;;  %3029 = vmatprep.mubr.msk.f32.mxu0 %vm3225_vm0, %v3224_v5  ;;  %3041 = vmatprep.mubr.msk.f32.mxu1 %vm3225_vm0, %v3224_v5  ;;  %v114_v15 = vpop.permute.xlu1 %113  ;;  %v415_v0 = vld [vmem:[%s5149_s5 + $0x50] sm:$0xff]  ;;  %v417_v1 = vld [vmem:[%s5149_s5 + $0x60] sm:$0xff] }
  0x92   :  { %v182_v13 = vmax.f32 %v167_v4, 0.0  ;;  %v147_v14 = vmul.f32 %v3366_v23, %v109_v10  ;;  %2537 = vmatpush1.msk.msra.mxu1 %vm617_vm2, %v513_v2  ;;  %818 = vmatprep.subr.mxu0 %v462_v3  ;;  %v183_v22 = vmax.f32 %v168_v12, 0.0  ;;  %v148_v25 = vmul.f32 %v3366_v23, %v114_v15  ;;  %v414_v2 = vld [vmem:[%s5149_s5 + $0x48] sm:$0xff]  ;;  %v416_v3 = vld [vmem:[%s5149_s5 + $0x58] sm:$0xff] }
  0x93   :  { %653 = vmatprep.subr.mxu1 %v505_v6  ;;  %819 = vmatpush1.msra.mxu0 %v461_v7  ;;  %v406_v4 = vld [vmem:[%s5149_s5 + $0x8] sm:$0xff]  ;;  %v408_v6 = vld [vmem:[%s5149_s5 + $0x18] sm:$0xff]  ;;  %v405_v7 = vld [vmem:[%s5149_s5] sm:$0xff] }
  0x94   :  { %3030 = vmatmul.mubr.msk.f32.gmra.mxu0 %vm200_vm3, %v178_v9  ;;  %3042 = vmatmul.mubr.msk.f32.gmra.mxu1 %vm200_vm3, %v182_v13  ;;  %v169_v26 = vadd.f32 %v3371_v24, %v147_v14  ;;  %v170_v33 = vadd.f32 %v3371_v24, %v148_v25  ;;  %v518_v9 = vld [vmem:[%s5149_s5 + $0x388] sm:$0xf]  ;;  %v520_v10 = vld [vmem:[%s5149_s5 + $0x398] sm:$0xf] }
  0x95   :  { %3032 = vmatprep.mubr.msk.f32.mxu0 %vm3225_vm0, %v3224_v5  ;;  %3044 = vmatprep.mubr.msk.f32.mxu1 %vm3225_vm0, %v3224_v5  ;;  %v119_v27 = vpop.permute.xlu0 %118  ;;  %v124_v37 = vpop.permute.xlu1 %123 }
  0x96   :  { %654 = vmatpush1.msra.mxu1 %v504_v16  ;;  %820 = vmatprep.subr.mxu0 %v453_v17  ;;  %v184_v34 = vmax.f32 %v169_v26, 0.0  ;;  %v149_v35 = vmul.f32 %v3366_v23, %v119_v27  ;;  %v185_v43 = vmax.f32 %v170_v33, 0.0  ;;  %v150_v44 = vmul.f32 %v3366_v23, %v124_v37  ;;  %v517_v16 = vld [vmem:[%s5149_s5 + $0x380] sm:$0xf]  ;;  %v500_v27 = vld [vmem:[%s5149_s5 + $0x2f8] sm:$0xff]  ;;  %v502_v37 = vld [vmem:[%s5149_s5 + $0x308] sm:$0xff] }
  0x97   :  { %655 = vmatprep.subr.mxu1 %v496_v18  ;;  %821 = vmatpush1.msra.mxu0 %v452_v19  ;;  %v509_v18 = vld [vmem:[%s5149_s5 + $0x340] sm:$0xff] }
  0x98   :  { %3033 = vmatmul.mubr.msk.f32.gmra.mxu0 %vm200_vm3, %v179_v20  ;;  %3045 = vmatmul.mubr.msk.f32.gmra.mxu1 %vm200_vm3, %v183_v22  ;;  %v171_v45 = vadd.f32 %v3371_v24, %v149_v35  ;;  %v172_v52 = vadd.f32 %v3371_v24, %v150_v44  ;;  %v508_v20 = vld [vmem:[%s5149_s5 + $0x338] sm:$0xff] }
  0x99   :  { %3035 = vmatprep.mubr.msk.f32.mxu0 %vm3225_vm0, %v3224_v5  ;;  %3047 = vmatprep.mubr.msk.f32.mxu1 %vm3225_vm0, %v3224_v5  ;;  %v129_v47 = vpop.permute.xlu0 %128 }
  0x9a   :  { %656 = vmatpush1.msra.mxu1 %v495_v28  ;;  %822 = vmatprep.subr.mxu0 %v444_v29  ;;  %v186_v53 = vmax.f32 %v171_v45, 0.0  ;;  %v151_v54 = vmul.f32 %v3366_v23, %v129_v47  ;;  %v441_v23 = vld [vmem:[%s5149_s5 + $0x120] sm:$0xff]  ;;  %v187_v58 = vmax.f32 %v172_v52, 0.0  ;;  %v511_v28 = vld [vmem:[%s5149_s5 + $0x350] sm:$0xff] }
  0x9b   :  { %657 = vmatprep.subr.mxu1 %v487_v30  ;;  %823 = vmatpush1.msra.mxu0 %v443_v31  ;;  %v499_v30 = vld [vmem:[%s5149_s5 + $0x2f0] sm:$0xff]  ;;  %v510_v31 = vld [vmem:[%s5149_s5 + $0x348] sm:$0xff]  ;;  %v493_v47 = vld [vmem:[%s5149_s5 + $0x2c0] sm:$0xff] }
  0x9c   :  { %3036 = vmatmul.mubr.msk.f32.gmra.mxu0 %vm200_vm3, %v180_v32  ;;  %3048 = vmatmul.mubr.msk.f32.gmra.mxu1 %vm200_vm3, %v184_v34  ;;  %v173_v59 = vadd.f32 %v3371_v24, %v151_v54 }
  0x9d   :  { %3050 = vmatprep.mubr.msk.f32.mxu1 %vm3225_vm0, %v3224_v5  ;;  %658 = vmatpush1.msra.mxu1 %v486_v36  ;;  %v491_v36 = vld [vmem:[%s5149_s5 + $0x2b0] sm:$0xff] }
  0x9e   :  { %659 = vmatprep.subr.mxu1 %v478_v38  ;;  %824 = vmatprep.subr.mxu0 %v435_v39  ;;  %v188_v24 = vmax.f32 %v173_v59, 0.0  ;;  %v490_v39 = vld [vmem:[%s5149_s5 + $0x2a8] sm:$0xff]  ;;  %v483_v59 = vld [vmem:[%s5149_s5 + $0x270] sm:$0xff] }
  0x9f   :  { %660 = vmatpush1.msra.mxu1 %v477_v40  ;;  %825 = vmatpush1.msra.mxu0 %v434_v41  ;;  %v501_v40 = vld [vmem:[%s5149_s5 + $0x300] sm:$0xff] }
  0xa0   :  { %3051 = vmatmul.mubr.msk.f32.gmra.mxu1 %vm200_vm3, %v185_v43  ;;  %661 = vmatprep.subr.mxu1 %v469_v42 }
  0xa1   :  { %3053 = vmatprep.mubr.msk.f32.mxu1 %vm3225_vm0, %v3224_v5  ;;  %662 = vmatpush1.msra.mxu1 %v468_v46  ;;  %v482_v46 = vld [vmem:[%s5149_s5 + $0x268] sm:$0xff] }
  0xa2   :  { %663 = vmatprep.subr.mxu1 %v460_v48  ;;  %826 = vmatprep.subr.mxu0 %v426_v49  ;;  %v481_v49 = vld [vmem:[%s5149_s5 + $0x260] sm:$0xff] }
  0xa3   :  { %664 = vmatpush1.msra.mxu1 %v459_v50  ;;  %864 = vmatprep.mubr.f32.mxu0 %v3224_v5  ;;  %v492_v50 = vld [vmem:[%s5149_s5 + $0x2b8] sm:$0xff] }
  0xa4   :  { %3054 = vmatmul.mubr.msk.f32.gmra.mxu1 %vm200_vm3, %v186_v53  ;;  %665 = vmatprep.subr.mxu1 %v451_v51 }
  0xa5   :  { %3056 = vmatprep.mubr.msk.f32.mxu1 %vm3225_vm0, %v3224_v5  ;;  %666 = vmatpush1.msra.mxu1 %v450_v55 }
  0xa6   :  { %667 = vmatprep.subr.mxu1 %v442_v56  ;;  %827 = vmatpush1.msra.mxu0 %v425_v63  ;;  %v473_v56 = vld [vmem:[%s5149_s5 + $0x220] sm:$0xff] }
  0xa7   :  { %668 = vmatpush1.msra.mxu1 %v441_v23  ;;  %828 = vmatprep.subr.mxu0 %v417_v1  ;;  %v484_v23 = vld [vmem:[%s5149_s5 + $0x278] sm:$0xff]  ;;  %v475_v1 = vld [vmem:[%s5149_s5 + $0x230] sm:$0xff] }
  0xa8   :  { %3057 = vmatmul.mubr.msk.f32.gmra.mxu1 %vm200_vm3, %v187_v58  ;;  %669 = vmatprep.subr.mxu1 %v433_v57  ;;  %v472_v58 = vld [vmem:[%s5149_s5 + $0x218] sm:$0xff] }
  0xa9   :  { %3059 = vmatprep.mubr.msk.f32.mxu1 %vm3225_vm0, %v3224_v5  ;;  %670 = vmatpush1.msra.mxu1 %v432_v60 }
  0xaa   :  { %671 = vmatprep.subr.mxu1 %v424_v61  ;;  %829 = vmatpush1.msra.mxu0 %v416_v3  ;;  %v463_v3 = vld [vmem:[%s5149_s5 + $0x1d0] sm:$0xff] }
  0xab   :  { %672 = vmatpush1.msra.mxu1 %v423_v62  ;;  %830 = vmatprep.subr.mxu0 %v408_v6 }
  0xac   :  { %3060 = vmatmul.mubr.msk.f32.gmra.mxu1 %vm200_vm3, %v188_v24  ;;  %673 = vmatprep.subr.mxu1 %v415_v0  ;;  %v464_v0 = vld [vmem:[%s5149_s5 + $0x1d8] sm:$0xff] }
  0xad   :  { %709 = vmatprep.mubr.f32.mxu1 %v3224_v5  ;;  %674 = vmatpush1.msra.mxu1 %v414_v2 }
  0xae   :  { %675 = vmatprep.subr.mxu1 %v406_v4  ;;  %831 = vmatpush1.msra.mxu0 %v407_v8  ;;  %v474_v4 = vld [vmem:[%s5149_s5 + $0x228] sm:$0xff] }
  0xaf   :  { %676 = vmatpush1.msra.mxu1 %v405_v7  ;;  %2587 = vmatprep.subr.msk.mxu0 %vm617_vm2, %v520_v10 }
  0xb0   :  { %2570 = vmatprep.subr.msk.mxu1 %vm617_vm2, %v518_v9 }
 0x144   :  { %v316_v12 = vpop.f32.mrf.mxu0 }
 0x145   :  { %v317_v13 = vadd.f32 %v3609_v11, %v316_v12  ;;  %v455_v12 = vld [vmem:[%s5149_s5 + $0x190] sm:$0xff] }
 0x146   :  { %v3019_v14 = vpop.f32.mrf.mxu0 }
 0x147   :  { %v3612_v15 = vmax.f32 %v317_v13, 0.0  ;;  %v466_v13 = vld [vmem:[%s5149_s5 + $0x1e8] sm:$0xff] }
 0x148   :  { %v321_v17 = vpop.f32.mrf.mxu0  ;;  %v454_v14 = vld [vmem:[%s5149_s5 + $0x188] sm:$0xff] }
 0x149   :  { %v322_v19 = vadd.f32 %v3609_v11, %v321_v17  ;;  %2538 = vmatmul.mubr.msk.f32.vlgmr.msra.gmra.mxu1 %vm571_vm4, %v3612_v15  ;;  %2555 = vmatmul.mubr.msk.f32.vlgmr.msra.gmra.mxu0 %vm571_vm4, %v3612_v15 }
 0x14a   :  { %2571 = vmatpush1.msk.msra.mxu1 %vm617_vm2, %v517_v16  ;;  %v3022_v22 = vpop.f32.mrf.mxu0  ;;  %715 = vmatprep.mubr.f32.mxu1 %v3224_v5  ;;  %v465_v16 = vld [vmem:[%s5149_s5 + $0x1e0] sm:$0xff] }
 0x14b   :  { %v3633_v25 = vmax.f32 %v322_v19, 0.0  ;;  %870 = vmatprep.mubr.f32.mxu0 %v3224_v5  ;;  %963 = vmatprep.subr.mxu1 %v509_v18  ;;  %v457_v22 = vld [vmem:[%s5149_s5 + $0x1a0] sm:$0xff] }
 0x14c   :  { %v326_v26 = vpop.f32.mrf.mxu0  ;;  %964 = vmatpush1.msra.mxu1 %v508_v20  ;;  %2588 = vmatpush1.msk.msra.mxu0 %vm617_vm2, %v519_v21  ;;  %v446_v21 = vld [vmem:[%s5149_s5 + $0x148] sm:$0xff] }
 0x14d   :  { %v327_v29 = vadd.f32 %v3609_v11, %v326_v26  ;;  %2539 = vmatmul.mubr.msk.f32.gmra.mxu1 %vm571_vm4, %v3633_v25  ;;  %2556 = vmatmul.mubr.msk.f32.gmra.mxu0 %vm571_vm4, %v3633_v25  ;;  %v445_v26 = vld [vmem:[%s5149_s5 + $0x140] sm:$0xff] }
 0x14e   :  { %v3025_v32 = vpop.f32.mrf.mxu0  ;;  %721 = vmatprep.mubr.f32.mxu1 %v3224_v5  ;;  %876 = vmatprep.mubr.f32.mxu0 %v3224_v5 }
 0x14f   :  { %v3656_v33 = vmax.f32 %v327_v29, 0.0  ;;  %965 = vmatprep.subr.mxu1 %v500_v27  ;;  %1118 = vmatprep.subr.mxu0 %v511_v28  ;;  %v456_v27 = vld [vmem:[%s5149_s5 + $0x198] sm:$0xff]  ;;  %v437_v32 = vld [vmem:[%s5149_s5 + $0x100] sm:$0xff] }
 0x150   :  { %v331_v34 = vpop.f32.mrf.mxu0  ;;  %v3658_v35 = vpop.f32.mrf.mxu1  ;;  %966 = vmatpush1.msra.mxu1 %v499_v30  ;;  %1119 = vmatpush1.msra.mxu0 %v510_v31 }
 0x151   :  { %v332_v38 = vadd.f32 %v3609_v11, %v331_v34  ;;  %2540 = vmatmul.mubr.msk.f32.gmra.mxu1 %vm571_vm4, %v3656_v33  ;;  %2557 = vmatmul.mubr.msk.f32.gmra.mxu0 %vm571_vm4, %v3656_v33  ;;  %v352_v8 = vadd.f32 %v3609_v11, %v3658_v35  ;;  %v448_v34 = vld [vmem:[%s5149_s5 + $0x158] sm:$0xff] }
 0x152   :  { %v3028_v41 = vpop.f32.mrf.mxu0  ;;  %v3040_v42 = vpop.f32.mrf.mxu1  ;;  %727 = vmatprep.mubr.f32.mxu1 %v3224_v5  ;;  %882 = vmatprep.mubr.f32.mxu0 %v3224_v5  ;;  %v436_v35 = vld [vmem:[%s5149_s5 + $0xf8] sm:$0xff] }
 0x153   :  { %v3679_v43 = vmax.f32 %v332_v38, 0.0  ;;  %967 = vmatprep.subr.mxu1 %v491_v36  ;;  %1120 = vmatprep.subr.mxu0 %v502_v37  ;;  %v3770_v18 = vmax.f32 %v352_v8, 0.0  ;;  %v447_v36 = vld [vmem:[%s5149_s5 + $0x150] sm:$0xff]  ;;  %v428_v41 = vld [vmem:[%s5149_s5 + $0xb8] sm:$0xff]  ;;  %v1569_v8 = vld [vmem:[%s5153_s7 + $0xe8] sm:$0xff] }
 0x154   :  { %v336_v44 = vpop.f32.mrf.mxu0  ;;  %v3681_v45 = vpop.f32.mrf.mxu1  ;;  %968 = vmatpush1.msra.mxu1 %v490_v39  ;;  %1121 = vmatpush1.msra.mxu0 %v501_v40  ;;  %v439_v42 = vld [vmem:[%s5149_s5 + $0x110] sm:$0xff] }
 0x155   :  { %v337_v48 = vadd.f32 %v3609_v11, %v336_v44  ;;  %2541 = vmatmul.mubr.msk.f32.gmra.mxu1 %vm571_vm4, %v3679_v43  ;;  %2558 = vmatmul.mubr.msk.f32.gmra.mxu0 %vm571_vm4, %v3679_v43  ;;  %v357_v19 = vadd.f32 %v3609_v11, %v3681_v45  ;;  %v427_v44 = vld [vmem:[%s5149_s5 + $0xb0] sm:$0xff]  ;;  %v438_v45 = vld [vmem:[%s5149_s5 + $0x108] sm:$0xff] }
 0x156   :  { %v3031_v51 = vpop.f32.mrf.mxu0  ;;  %v3043_v52 = vpop.f32.mrf.mxu1  ;;  %733 = vmatprep.mubr.f32.mxu1 %v3224_v5  ;;  %888 = vmatprep.mubr.f32.mxu0 %v3224_v5 }
 0x157   :  { %v3702_v53 = vmax.f32 %v337_v48, 0.0  ;;  %969 = vmatprep.subr.mxu1 %v482_v46  ;;  %1122 = vmatprep.subr.mxu0 %v493_v47  ;;  %v3792_v29 = vmax.f32 %v357_v19, 0.0  ;;  %v418_v51 = vld [vmem:[%s5149_s5 + $0x68] sm:$0xff]  ;;  %v429_v52 = vld [vmem:[%s5149_s5 + $0xc0] sm:$0xff] }
 0x158   :  { %v341_v54 = vpop.f32.mrf.mxu0  ;;  %v3704_v55 = vpop.f32.mrf.mxu1  ;;  %970 = vmatpush1.msra.mxu1 %v481_v49  ;;  %1123 = vmatpush1.msra.mxu0 %v492_v50  ;;  %v419_v49 = vld [vmem:[%s5149_s5 + $0x70] sm:$0xff]  ;;  %v430_v50 = vld [vmem:[%s5149_s5 + $0xc8] sm:$0xff]  ;;  %v485_v19 = vld [vmem:[%s5149_s5 + $0x280] sm:$0xff] }
 0x159   :  { %v342_v57 = vadd.f32 %v3609_v11, %v341_v54  ;;  %2542 = vmatmul.mubr.msk.f32.gmra.mxu1 %vm571_vm4, %v3702_v53  ;;  %2559 = vmatmul.mubr.msk.f32.gmra.mxu0 %vm571_vm4, %v3702_v53  ;;  %v362_v30 = vadd.f32 %v3609_v11, %v3704_v55 }
 0x15a   :  { %v3034_v60 = vpop.f32.mrf.mxu0  ;;  %v3046_v61 = vpop.f32.mrf.mxu1  ;;  %739 = vmatprep.mubr.f32.mxu1 %v3224_v5  ;;  %894 = vmatprep.mubr.f32.mxu0 %v3224_v5 }
 0x15b   :  { %v3725_v62 = vmax.f32 %v342_v57, 0.0  ;;  %971 = vmatprep.subr.mxu1 %v473_v56  ;;  %1124 = vmatprep.subr.mxu0 %v484_v23  ;;  %v3814_v38 = vmax.f32 %v362_v30, 0.0  ;;  %v410_v56 = vld [vmem:[%s5149_s5 + $0x28] sm:$0xff]  ;;  %v421_v23 = vld [vmem:[%s5149_s5 + $0x80] sm:$0xff]  ;;  %v412_v61 = vld [vmem:[%s5149_s5 + $0x38] sm:$0xff] }
 0x15c   :  { %v346_v24 = vpop.f32.mrf.mxu0  ;;  %v3727_v63 = vpop.f32.mrf.mxu1  ;;  %972 = vmatpush1.msra.mxu1 %v472_v58  ;;  %1125 = vmatpush1.msra.mxu0 %v483_v59  ;;  %v409_v57 = vld [vmem:[%s5149_s5 + $0x20] sm:$0xff]  ;;  %v420_v58 = vld [vmem:[%s5149_s5 + $0x78] sm:$0xff]  ;;  %v1549_v30 = vld [vmem:[%s5153_s7 + $0x48] sm:$0xff] }
 0x15d   :  { %v347_v2 = vadd.f32 %v3609_v11, %v346_v24  ;;  %2543 = vmatmul.mubr.msk.f32.gmra.mxu1 %vm571_vm4, %v3725_v62  ;;  %2560 = vmatmul.mubr.msk.f32.gmra.mxu0 %vm571_vm4, %v3725_v62  ;;  %v367_v39 = vadd.f32 %v3609_v11, %v3727_v63  ;;  %v411_v24 = vld [vmem:[%s5149_s5 + $0x30] sm:$0xff] }
 0x15e   :  { %v3037_v6 = vpop.f32.mrf.mxu0  ;;  %v3049_v7 = vpop.f32.mrf.mxu1  ;;  %745 = vmatprep.mubr.f32.mxu1 %v3224_v5  ;;  %900 = vmatprep.mubr.f32.mxu0 %v3224_v5 }
 0x15f   :  { %v3750_v9 = vmax.f32 %v347_v2, 0.0  ;;  %973 = vmatprep.subr.mxu1 %v464_v0  ;;  %1126 = vmatprep.subr.mxu0 %v475_v1  ;;  %v3836_v47 = vmax.f32 %v367_v39, 0.0  ;;  %v1571_v1 = vld [vmem:[%s5153_s7 + $0xf8] sm:$0xff]  ;;  %v1554_v7 = vld [vmem:[%s5153_s7 + $0x70] sm:$0xff] }
 0x160   :  { %v371_v10 = vpop.f32.mrf.mxu1  ;;  %974 = vmatpush1.msra.mxu1 %v463_v3  ;;  %1127 = vmatpush1.msra.mxu0 %v474_v4  ;;  %v1555_v3 = vld [vmem:[%s5153_s7 + $0x78] sm:$0xff]  ;;  %v1570_v4 = vld [vmem:[%s5153_s7 + $0xf0] sm:$0xff] }
 0x161   :  { %2544 = vmatmul.mubr.msk.f32.gmra.mxu1 %vm571_vm4, %v3750_v9  ;;  %2561 = vmatmul.mubr.msk.f32.gmra.mxu0 %vm571_vm4, %v3750_v9  ;;  %v372_v48 = vadd.f32 %v3609_v11, %v371_v10  ;;  %v512_v6 = vld [vmem:[%s5149_s5 + $0x358] sm:$0xff]  ;;  %v503_v10 = vld [vmem:[%s5149_s5 + $0x310] sm:$0xff] }
 0x162   :  { %v3052_v17 = vpop.f32.mrf.mxu1  ;;  %751 = vmatprep.mubr.f32.mxu1 %v3224_v5  ;;  %906 = vmatprep.mubr.f32.mxu0 %v3224_v5  ;;  %v1562_v39 = vld [vmem:[%s5153_s7 + $0xb0] sm:$0xff] }
 0x163   :  { %975 = vmatprep.subr.mxu1 %v455_v12  ;;  %1128 = vmatprep.subr.mxu0 %v466_v13  ;;  %v3857_v54 = vmax.f32 %v372_v48, 0.0  ;;  %v1553_v12 = vld [vmem:[%s5153_s7 + $0x68] sm:$0xff]  ;;  %v1568_v13 = vld [vmem:[%s5153_s7 + $0xe0] sm:$0xff]  ;;  %v1567_v17 = vld [vmem:[%s5153_s7 + $0xd8] sm:$0xff] }
 0x164   :  { %v376_v20 = vpop.f32.mrf.mxu1  ;;  %976 = vmatpush1.msra.mxu1 %v454_v14  ;;  %1129 = vmatpush1.msra.mxu0 %v465_v16  ;;  %v494_v14 = vld [vmem:[%s5149_s5 + $0x2c8] sm:$0xff]  ;;  %v1552_v16 = vld [vmem:[%s5153_s7 + $0x60] sm:$0xff] }
 0x165   :  { %2545 = vmatmul.mubr.msk.f32.gmra.mxu1 %vm571_vm4, %v3770_v18  ;;  %2562 = vmatmul.mubr.msk.f32.gmra.mxu0 %vm571_vm4, %v3770_v18  ;;  %v377_v55 = vadd.f32 %v3609_v11, %v376_v20  ;;  %v1551_v20 = vld [vmem:[%s5153_s7 + $0x58] sm:$0xff]  ;;  %v422_v48 = vld [vmem:[%s5149_s5 + $0x88] sm:$0xff] }
 0x166   :  { %v3055_v28 = vpop.f32.mrf.mxu1  ;;  %757 = vmatprep.mubr.f32.mxu1 %v3224_v5  ;;  %912 = vmatprep.mubr.f32.mxu0 %v3224_v5 }
 0x167   :  { %977 = vmatprep.subr.mxu1 %v446_v21  ;;  %1130 = vmatprep.subr.mxu0 %v457_v22  ;;  %v3878_v59 = vmax.f32 %v377_v55, 0.0  ;;  %v1566_v21 = vld [vmem:[%s5153_s7 + $0xd0] sm:$0xff]  ;;  %v476_v22 = vld [vmem:[%s5149_s5 + $0x238] sm:$0xff] }
 0x168   :  { %v381_v31 = vpop.f32.mrf.mxu1  ;;  %978 = vmatpush1.msra.mxu1 %v445_v26  ;;  %1131 = vmatpush1.msra.mxu0 %v456_v27  ;;  %v1550_v26 = vld [vmem:[%s5153_s7 + $0x50] sm:$0xff]  ;;  %v1565_v27 = vld [vmem:[%s5153_s7 + $0xc8] sm:$0xff]  ;;  %v1603_v55 = vld [vmem:[%s5153_s7 + $0x1f8] sm:$0xff] }
 0x169   :  { %2546 = vmatmul.mubr.msk.f32.gmra.mxu1 %vm571_vm4, %v3792_v29  ;;  %2563 = vmatmul.mubr.msk.f32.gmra.mxu0 %vm571_vm4, %v3792_v29  ;;  %v382_v60 = vadd.f32 %v3609_v11, %v381_v31  ;;  %v467_v28 = vld [vmem:[%s5149_s5 + $0x1f0] sm:$0xff]  ;;  %v1564_v31 = vld [vmem:[%s5153_s7 + $0xc0] sm:$0xff] }
 0x16a   :  { %v3058_v37 = vpop.f32.mrf.mxu1  ;;  %763 = vmatprep.mubr.f32.mxu1 %v3224_v5  ;;  %918 = vmatprep.mubr.f32.mxu0 %v3224_v5 }
 0x16b   :  { %979 = vmatprep.subr.mxu1 %v437_v32  ;;  %1132 = vmatprep.subr.mxu0 %v448_v34  ;;  %v3893_v63 = vmax.f32 %v382_v60, 0.0  ;;  %v458_v32 = vld [vmem:[%s5149_s5 + $0x1a8] sm:$0xff]  ;;  %v1548_v34 = vld [vmem:[%s5153_s7 + $0x40] sm:$0xff]  ;;  %v1547_v37 = vld [vmem:[%s5153_s7 + $0x38] sm:$0xff] }
 0x16c   :  { %v386_v40 = vpop.f32.mrf.mxu1  ;;  %980 = vmatpush1.msra.mxu1 %v436_v35  ;;  %1133 = vmatpush1.msra.mxu0 %v447_v36  ;;  %v1563_v35 = vld [vmem:[%s5153_s7 + $0xb8] sm:$0xff]  ;;  %v449_v36 = vld [vmem:[%s5149_s5 + $0x160] sm:$0xff] }
 0x16d   :  { %2547 = vmatmul.mubr.msk.f32.gmra.mxu1 %vm571_vm4, %v3814_v38  ;;  %2564 = vmatmul.mubr.msk.f32.gmra.mxu0 %vm571_vm4, %v3814_v38  ;;  %v387_v0 = vadd.f32 %v3609_v11, %v386_v40  ;;  %v521_v11 = vld [vmem:[%s5149_s5 + $0x3a0] sm:$0xf]  ;;  %v440_v40 = vld [vmem:[%s5149_s5 + $0x118] sm:$0xff] }
 0x16e   :  { %v3061_v46 = vpop.f32.mrf.mxu1  ;;  %769 = vmatprep.mubr.f32.mxu1 %v3224_v5  ;;  %924 = vmatprep.mubr.f32.mxu0 %v3224_v5  ;;  %v1556_v60 = vld [vmem:[%s5153_s7 + $0x80] sm:$0xff] }
 0x16f   :  { %981 = vmatprep.subr.mxu1 %v428_v41  ;;  %1134 = vmatprep.subr.mxu0 %v439_v42  ;;  %v3906_v2 = vmax.f32 %v387_v0, 0.0  ;;  %v1546_v41 = vld [vmem:[%s5153_s7 + $0x30] sm:$0xff]  ;;  %v1561_v42 = vld [vmem:[%s5153_s7 + $0xa8] sm:$0xff]  ;;  %v1560_v46 = vld [vmem:[%s5153_s7 + $0xa0] sm:$0xff] }
 0x170   :  { %982 = vmatpush1.msra.mxu1 %v427_v44  ;;  %1135 = vmatpush1.msra.mxu0 %v438_v45  ;;  %v431_v44 = vld [vmem:[%s5149_s5 + $0xd0] sm:$0xff]  ;;  %v1545_v45 = vld [vmem:[%s5153_s7 + $0x28] sm:$0xff]  ;;  %v1587_v0 = vld [vmem:[%s5153_s7 + $0x178] sm:$0xff] }
 0x171   :  { %2548 = vmatmul.mubr.msk.f32.gmra.mxu1 %vm571_vm4, %v3836_v47  ;;  %2565 = vmatmul.mubr.msk.f32.gmra.mxu0 %vm571_vm4, %v3836_v47 }
 0x172   :  { %775 = vmatprep.mubr.f32.mxu1 %v3224_v5  ;;  %930 = vmatprep.mubr.f32.mxu0 %v3224_v5 }
 0x173   :  { %983 = vmatprep.subr.mxu1 %v419_v49  ;;  %1136 = vmatprep.subr.mxu0 %v430_v50  ;;  %v1544_v49 = vld [vmem:[%s5153_s7 + $0x20] sm:$0xff]  ;;  %v1559_v50 = vld [vmem:[%s5153_s7 + $0x98] sm:$0xff] }
 0x174   :  { %984 = vmatpush1.msra.mxu1 %v418_v51  ;;  %1137 = vmatpush1.msra.mxu0 %v429_v52  ;;  %v413_v51 = vld [vmem:[%s5149_s5 + $0x40] sm:$0xff]  ;;  %v1543_v52 = vld [vmem:[%s5153_s7 + $0x18] sm:$0xff] }
 0x175   :  { %2549 = vmatmul.mubr.msk.f32.gmra.mxu1 %vm571_vm4, %v3857_v54  ;;  %2566 = vmatmul.mubr.msk.f32.gmra.mxu0 %vm571_vm4, %v3857_v54 }
 0x176   :  { %781 = vmatprep.mubr.f32.mxu1 %v3224_v5  ;;  %936 = vmatprep.mubr.f32.mxu0 %v3224_v5 }
 0x177   :  { %985 = vmatprep.subr.mxu1 %v410_v56  ;;  %1138 = vmatprep.subr.mxu0 %v421_v23  ;;  %v1558_v56 = vld [vmem:[%s5153_s7 + $0x90] sm:$0xff] }
 0x178   :  { %986 = vmatpush1.msra.mxu1 %v409_v57  ;;  %1139 = vmatpush1.msra.mxu0 %v420_v58  ;;  %v1542_v23 = vld [vmem:[%s5153_s7 + $0x10] sm:$0xff]  ;;  %v1557_v57 = vld [vmem:[%s5153_s7 + $0x88] sm:$0xff] }
 0x179   :  { %2550 = vmatmul.mubr.msk.f32.gmra.mxu1 %vm571_vm4, %v3878_v59  ;;  %2567 = vmatmul.mubr.msk.f32.gmra.mxu0 %vm571_vm4, %v3878_v59  ;;  %v1541_v58 = vld [vmem:[%s5153_s7 + $0x8] sm:$0xff] }
 0x17a   :  { %787 = vmatprep.mubr.f32.mxu1 %v3224_v5  ;;  %942 = vmatprep.mubr.f32.mxu0 %v3224_v5 }
 0x17b   :  { %1140 = vmatprep.subr.mxu0 %v412_v61  ;;  %3062 = vmatprep.subr.mxu1 %v3224_v5  ;;  %v1540_v61 = vld [vmem:[%s5153_s7] sm:$0xff] }
 0x17c   :  { %1141 = vmatpush1.msra.mxu0 %v411_v24  ;;  %v1635_v24 = vld [vmem:[%s5153_s7 + $0x2f8] sm:$0xff] }
 0x17d   :  { %2551 = vmatmul.mubr.msk.f32.gmra.mxu1 %vm571_vm4, %v3893_v63  ;;  %2568 = vmatmul.mubr.msk.f32.gmra.mxu0 %vm571_vm4, %v3893_v63 }
 0x17e   :  { %793 = vmatprep.mubr.f32.mxu1 %v3224_v5  ;;  %948 = vmatprep.mubr.f32.mxu0 %v3224_v5 }
 0x17f   :  { %2670 = vmatprep.subr.mxu0 %v1571_v1  ;;  %v1602_v1 = vld [vmem:[%s5153_s7 + $0x1f0] sm:$0xff] }
 0x181   :  { %2552 = vmatmul.mubr.msk.f32.gmra.mxu1 %vm571_vm4, %v3906_v2  ;;  %2569 = vmatmul.mubr.msk.f32.gmra.mxu0 %vm571_vm4, %v3906_v2 }
 0x182   :  { %1019 = vmatprep.mubr.f32.mxu1 %v3224_v5  ;;  %1174 = vmatprep.mubr.f32.mxu0 %v3224_v5 }
 0x185   :  { %2572 = vmatmul.mubr.msk.f32.vlgmr.msra.gmra.mxu1 %vm571_vm4, %v3612_v15  ;;  %2589 = vmatmul.mubr.msk.f32.vlgmr.msra.gmra.mxu0 %vm571_vm4, %v3612_v15 }
 0x186   :  { %1025 = vmatprep.mubr.f32.mxu1 %v3224_v5  ;;  %1180 = vmatprep.mubr.f32.mxu0 %v3224_v5 }
 0x187   :  { %3063 = vmatpush3.msk.msra.mxu1 %vm617_vm2, %v521_v11  ;;  %2671 = vmatpush3.msra.mxu0 %v1555_v3  ;;  %v1586_v11 = vld [vmem:[%s5153_s7 + $0x170] sm:$0xff]  ;;  %v1601_v3 = vld [vmem:[%s5153_s7 + $0x1e8] sm:$0xff] }
 0x188   :  { %3064 = vmatprep.subr.mxu1 %v3224_v5  ;;  %2672 = vmatprep.subr.mxu0 %v1570_v4  ;;  %v1585_v4 = vld [vmem:[%s5153_s7 + $0x168] sm:$0xff] }
 0x189   :  { %2573 = vmatmul.mubr.msk.f32.gmra.mxu1 %vm571_vm4, %v3633_v25  ;;  %2590 = vmatmul.mubr.msk.f32.gmra.mxu0 %vm571_vm4, %v3633_v25 }
 0x18a   :  { %1031 = vmatprep.mubr.f32.mxu1 %v3224_v5  ;;  %1186 = vmatprep.mubr.f32.mxu0 %v3224_v5 }
 0x18b   :  { %3065 = vmatpush3.msra.mxu1 %v512_v6  ;;  %2673 = vmatpush3.msra.mxu0 %v1554_v7  ;;  %v1584_v6 = vld [vmem:[%s5153_s7 + $0x160] sm:$0xff]  ;;  %v1599_v7 = vld [vmem:[%s5153_s7 + $0x1d8] sm:$0xff] }
 0x18c   :  { %3066 = vmatprep.subr.mxu1 %v3224_v5  ;;  %2674 = vmatprep.subr.mxu0 %v1569_v8  ;;  %v1583_v8 = vld [vmem:[%s5153_s7 + $0x158] sm:$0xff] }
 0x18d   :  { %2574 = vmatmul.mubr.msk.f32.gmra.mxu1 %vm571_vm4, %v3656_v33  ;;  %2591 = vmatmul.mubr.msk.f32.gmra.mxu0 %vm571_vm4, %v3656_v33 }
 0x18e   :  { %1037 = vmatprep.mubr.f32.mxu1 %v3224_v5  ;;  %1192 = vmatprep.mubr.f32.mxu0 %v3224_v5 }
 0x18f   :  { %3067 = vmatpush3.msra.mxu1 %v503_v10  ;;  %2675 = vmatpush3.msra.mxu0 %v1553_v12  ;;  %v1582_v10 = vld [vmem:[%s5153_s7 + $0x150] sm:$0xff]  ;;  %v1597_v12 = vld [vmem:[%s5153_s7 + $0x1c8] sm:$0xff] }
 0x190   :  { %3068 = vmatprep.subr.mxu1 %v3224_v5  ;;  %2676 = vmatprep.subr.mxu0 %v1568_v13  ;;  %v1581_v13 = vld [vmem:[%s5153_s7 + $0x148] sm:$0xff] }
 0x191   :  { %2575 = vmatmul.mubr.msk.f32.gmra.mxu1 %vm571_vm4, %v3679_v43  ;;  %2592 = vmatmul.mubr.msk.f32.gmra.mxu0 %vm571_vm4, %v3679_v43 }
 0x192   :  { %1043 = vmatprep.mubr.f32.mxu1 %v3224_v5  ;;  %1198 = vmatprep.mubr.f32.mxu0 %v3224_v5 }
 0x193   :  { %3069 = vmatpush3.msra.mxu1 %v494_v14  ;;  %2677 = vmatpush3.msra.mxu0 %v1552_v16  ;;  %v1580_v14 = vld [vmem:[%s5153_s7 + $0x140] sm:$0xff]  ;;  %v1595_v16 = vld [vmem:[%s5153_s7 + $0x1b8] sm:$0xff] }
 0x194   :  { %3070 = vmatprep.subr.mxu1 %v3224_v5  ;;  %2678 = vmatprep.subr.mxu0 %v1567_v17  ;;  %v1579_v17 = vld [vmem:[%s5153_s7 + $0x138] sm:$0xff] }
 0x195   :  { %2576 = vmatmul.mubr.msk.f32.gmra.mxu1 %vm571_vm4, %v3702_v53  ;;  %2593 = vmatmul.mubr.msk.f32.gmra.mxu0 %vm571_vm4, %v3702_v53 }
 0x196   :  { %1049 = vmatprep.mubr.f32.mxu1 %v3224_v5  ;;  %1204 = vmatprep.mubr.f32.mxu0 %v3224_v5 }
 0x197   :  { %3071 = vmatpush3.msra.mxu1 %v485_v19  ;;  %2679 = vmatpush3.msra.mxu0 %v1551_v20  ;;  %v1578_v19 = vld [vmem:[%s5153_s7 + $0x130] sm:$0xff]  ;;  %v1593_v20 = vld [vmem:[%s5153_s7 + $0x1a8] sm:$0xff] }
 0x198   :  { %3072 = vmatprep.subr.mxu1 %v3224_v5  ;;  %2680 = vmatprep.subr.mxu0 %v1566_v21  ;;  %v1577_v21 = vld [vmem:[%s5153_s7 + $0x128] sm:$0xff] }
 0x199   :  { %2577 = vmatmul.mubr.msk.f32.gmra.mxu1 %vm571_vm4, %v3725_v62  ;;  %2594 = vmatmul.mubr.msk.f32.gmra.mxu0 %vm571_vm4, %v3725_v62 }
 0x19a   :  { %1055 = vmatprep.mubr.f32.mxu1 %v3224_v5  ;;  %1210 = vmatprep.mubr.f32.mxu0 %v3224_v5 }
 0x19b   :  { %3073 = vmatpush3.msra.mxu1 %v476_v22  ;;  %2681 = vmatpush3.msra.mxu0 %v1550_v26  ;;  %v1576_v22 = vld [vmem:[%s5153_s7 + $0x120] sm:$0xff]  ;;  %v1591_v26 = vld [vmem:[%s5153_s7 + $0x198] sm:$0xff] }
 0x19c   :  { %3074 = vmatprep.subr.mxu1 %v3224_v5  ;;  %2682 = vmatprep.subr.mxu0 %v1565_v27  ;;  %v1575_v27 = vld [vmem:[%s5153_s7 + $0x118] sm:$0xff] }
 0x19d   :  { %2578 = vmatmul.mubr.msk.f32.gmra.mxu1 %vm571_vm4, %v3750_v9  ;;  %2595 = vmatmul.mubr.msk.f32.gmra.mxu0 %vm571_vm4, %v3750_v9 }
 0x19e   :  { %1061 = vmatprep.mubr.f32.mxu1 %v3224_v5  ;;  %1216 = vmatprep.mubr.f32.mxu0 %v3224_v5 }
 0x19f   :  { %3075 = vmatpush3.msra.mxu1 %v467_v28  ;;  %2683 = vmatpush3.msra.mxu0 %v1549_v30  ;;  %v1574_v28 = vld [vmem:[%s5153_s7 + $0x110] sm:$0xff]  ;;  %v1589_v30 = vld [vmem:[%s5153_s7 + $0x188] sm:$0xff] }
 0x1a0   :  { %3076 = vmatprep.subr.mxu1 %v3224_v5  ;;  %2684 = vmatprep.subr.mxu0 %v1564_v31  ;;  %v1573_v31 = vld [vmem:[%s5153_s7 + $0x108] sm:$0xff] }
 0x1a1   :  { %2579 = vmatmul.mubr.msk.f32.gmra.mxu1 %vm571_vm4, %v3770_v18  ;;  %2596 = vmatmul.mubr.msk.f32.gmra.mxu0 %vm571_vm4, %v3770_v18 }
 0x1a2   :  { %1067 = vmatprep.mubr.f32.mxu1 %v3224_v5  ;;  %1222 = vmatprep.mubr.f32.mxu0 %v3224_v5 }
 0x1a3   :  { %3077 = vmatpush3.msra.mxu1 %v458_v32  ;;  %2685 = vmatpush3.msra.mxu0 %v1548_v34  ;;  %v1572_v32 = vld [vmem:[%s5153_s7 + $0x100] sm:$0xff]  ;;  %v1667_v34 = vld [vmem:[%s5153_s7 + $0x3f8] sm:$0xff] }
 0x1a4   :  { %3078 = vmatprep.subr.mxu1 %v3224_v5  ;;  %2686 = vmatprep.subr.mxu0 %v1563_v35 }
 0x1a5   :  { %2580 = vmatmul.mubr.msk.f32.gmra.mxu1 %vm571_vm4, %v3792_v29  ;;  %2597 = vmatmul.mubr.msk.f32.gmra.mxu0 %vm571_vm4, %v3792_v29 }
 0x1a6   :  { %1073 = vmatprep.mubr.f32.mxu1 %v3224_v5  ;;  %1228 = vmatprep.mubr.f32.mxu0 %v3224_v5 }
 0x1a7   :  { %3079 = vmatpush3.msra.mxu1 %v449_v36  ;;  %2687 = vmatpush3.msra.mxu0 %v1547_v37 }
 0x1a8   :  { %3080 = vmatprep.subr.mxu1 %v3224_v5  ;;  %2688 = vmatprep.subr.mxu0 %v1562_v39 }
 0x1a9   :  { %2581 = vmatmul.mubr.msk.f32.gmra.mxu1 %vm571_vm4, %v3814_v38  ;;  %2598 = vmatmul.mubr.msk.f32.gmra.mxu0 %vm571_vm4, %v3814_v38 }
 0x1aa   :  { %1079 = vmatprep.mubr.f32.mxu1 %v3224_v5  ;;  %1234 = vmatprep.mubr.f32.mxu0 %v3224_v5 }
 0x1ab   :  { %3081 = vmatpush3.msra.mxu1 %v440_v40  ;;  %2689 = vmatpush3.msra.mxu0 %v1546_v41 }
 0x1ac   :  { %3082 = vmatprep.subr.mxu1 %v3224_v5  ;;  %2690 = vmatprep.subr.mxu0 %v1561_v42 }
 0x1ad   :  { %2582 = vmatmul.mubr.msk.f32.gmra.mxu1 %vm571_vm4, %v3836_v47  ;;  %2599 = vmatmul.mubr.msk.f32.gmra.mxu0 %vm571_vm4, %v3836_v47 }
 0x1ae   :  { %1085 = vmatprep.mubr.f32.mxu1 %v3224_v5  ;;  %1240 = vmatprep.mubr.f32.mxu0 %v3224_v5 }
 0x1af   :  { %3083 = vmatpush3.msra.mxu1 %v431_v44  ;;  %2691 = vmatpush3.msra.mxu0 %v1545_v45 }
 0x1b0   :  { %3084 = vmatprep.subr.mxu1 %v3224_v5  ;;  %2692 = vmatprep.subr.mxu0 %v1560_v46 }
 0x1b1   :  { %2583 = vmatmul.mubr.msk.f32.gmra.mxu1 %vm571_vm4, %v3857_v54  ;;  %2600 = vmatmul.mubr.msk.f32.gmra.mxu0 %vm571_vm4, %v3857_v54 }
 0x1b2   :  { %1091 = vmatprep.mubr.f32.mxu1 %v3224_v5  ;;  %1246 = vmatprep.mubr.f32.mxu0 %v3224_v5 }
 0x1b3   :  { %3085 = vmatpush3.msra.mxu1 %v422_v48  ;;  %2693 = vmatpush3.msra.mxu0 %v1544_v49 }
 0x1b4   :  { %3086 = vmatprep.subr.mxu1 %v3224_v5  ;;  %2694 = vmatprep.subr.mxu0 %v1559_v50 }
 0x1b5   :  { %2584 = vmatmul.mubr.msk.f32.gmra.mxu1 %vm571_vm4, %v3878_v59  ;;  %2601 = vmatmul.mubr.msk.f32.gmra.mxu0 %vm571_vm4, %v3878_v59 }
 0x1b6   :  { %1097 = vmatprep.mubr.f32.mxu1 %v3224_v5  ;;  %1252 = vmatprep.mubr.f32.mxu0 %v3224_v5 }
 0x1b7   :  { %3087 = vmatpush3.msra.mxu1 %v413_v51  ;;  %2695 = vmatpush3.msra.mxu0 %v1543_v52 }
 0x1b8   :  { %2747 = vmatprep.subr.mxu1 %v1603_v55  ;;  %2696 = vmatprep.subr.mxu0 %v1558_v56 }
 0x1b9   :  { %2585 = vmatmul.mubr.msk.f32.gmra.mxu1 %vm571_vm4, %v3893_v63  ;;  %2602 = vmatmul.mubr.msk.f32.gmra.mxu0 %vm571_vm4, %v3893_v63 }
 0x1ba   :  { %1103 = vmatprep.mubr.f32.mxu1 %v3224_v5  ;;  %1258 = vmatprep.mubr.f32.mxu0 %v3224_v5 }
 0x1bb   :  { %2697 = vmatpush3.msra.mxu0 %v1542_v23 }
 0x1bc   :  { %2698 = vmatprep.subr.mxu0 %v1557_v57 }
 0x1bd   :  { %2586 = vmatmul.mubr.msk.f32.gmra.mxu1 %vm571_vm4, %v3906_v2  ;;  %2603 = vmatmul.mubr.msk.f32.gmra.mxu0 %vm571_vm4, %v3906_v2 }
 0x1be   :  { %3088 = vmatprep.mubr.msk.f32.mxu1 %vm3225_vm0, %v3224_v5  ;;  %2699 = vmatpush3.msra.mxu0 %v1541_v58 }
 0x1bf   :  { %2700 = vmatprep.subr.mxu0 %v1556_v60 }
 0x1c0   :  { %2701 = vmatpush3.msra.mxu0 %v1540_v61  ;;  %v1619_v61 = vld [vmem:[%s5153_s7 + $0x278] sm:$0xff] }
 0x1c1   :  { %3089 = vmatmul.mubr.msk.f32.vlgmr.msra.gmra.mxu1 %vm571_vm4, %v3612_v15  ;;  %2824 = vmatprep.subr.mxu0 %v1635_v24  ;;  %v1600_v15 = vld [vmem:[%s5153_s7 + $0x1e0] sm:$0xff]  ;;  %v1651_v24 = vld [vmem:[%s5153_s7 + $0x378] sm:$0xff] }
 0x1c2   :  { %3091 = vmatprep.mubr.msk.f32.mxu1 %vm3225_vm0, %v3224_v5  ;;  %2748 = vmatpush3.msra.mxu1 %v1587_v0 }
 0x1c3   :  { %2749 = vmatprep.subr.mxu1 %v1602_v1 }
 0x1c4   :  { %2750 = vmatpush3.msra.mxu1 %v1586_v11  ;;  %v1634_v11 = vld [vmem:[%s5153_s7 + $0x2f0] sm:$0xff] }
 0x1c5   :  { %3092 = vmatmul.mubr.msk.f32.gmra.mxu1 %vm571_vm4, %v3633_v25  ;;  %2751 = vmatprep.subr.mxu1 %v1601_v3  ;;  %v1598_v25 = vld [vmem:[%s5153_s7 + $0x1d0] sm:$0xff] }
 0x1c6   :  { %3094 = vmatprep.mubr.msk.f32.mxu1 %vm3225_vm0, %v3224_v5  ;;  %2752 = vmatpush3.msra.mxu1 %v1585_v4  ;;  %v1666_v3 = vld [vmem:[%s5153_s7 + $0x3f0] sm:$0xff] }
 0x1c7   :  { %2753 = vmatprep.subr.mxu1 %v1600_v15 }
 0x1c8   :  { %2754 = vmatpush3.msra.mxu1 %v1584_v6 }
 0x1c9   :  { %3095 = vmatmul.mubr.msk.f32.gmra.mxu1 %vm571_vm4, %v3656_v33  ;;  %2755 = vmatprep.subr.mxu1 %v1599_v7  ;;  %v1596_v33 = vld [vmem:[%s5153_s7 + $0x1c0] sm:$0xff] }
 0x1ca   :  { %3097 = vmatprep.mubr.msk.f32.mxu1 %vm3225_vm0, %v3224_v5  ;;  %2756 = vmatpush3.msra.mxu1 %v1583_v8 }
 0x1cb   :  { %2757 = vmatprep.subr.mxu1 %v1598_v25 }
 0x1cc   :  { %2758 = vmatpush3.msra.mxu1 %v1582_v10 }
 0x1cd   :  { %3098 = vmatmul.mubr.msk.f32.gmra.mxu1 %vm571_vm4, %v3679_v43  ;;  %2759 = vmatprep.subr.mxu1 %v1597_v12  ;;  %v1594_v43 = vld [vmem:[%s5153_s7 + $0x1b0] sm:$0xff] }
 0x1ce   :  { %3100 = vmatprep.mubr.msk.f32.mxu1 %vm3225_vm0, %v3224_v5  ;;  %2760 = vmatpush3.msra.mxu1 %v1581_v13 }
 0x1cf   :  { %2761 = vmatprep.subr.mxu1 %v1596_v33 }
 0x1d0   :  { %2762 = vmatpush3.msra.mxu1 %v1580_v14  ;;  %v1618_v14 = vld [vmem:[%s5153_s7 + $0x270] sm:$0xff] }
 0x1d1   :  { %3101 = vmatmul.mubr.msk.f32.gmra.mxu1 %vm571_vm4, %v3702_v53  ;;  %2763 = vmatprep.subr.mxu1 %v1595_v16  ;;  %v1592_v53 = vld [vmem:[%s5153_s7 + $0x1a0] sm:$0xff]  ;;  %v1650_v16 = vld [vmem:[%s5153_s7 + $0x370] sm:$0xff] }
 0x1d2   :  { %3103 = vmatprep.mubr.msk.f32.mxu1 %vm3225_vm0, %v3224_v5  ;;  %2764 = vmatpush3.msra.mxu1 %v1579_v17 }
 0x1d3   :  { %2765 = vmatprep.subr.mxu1 %v1594_v43 }
 0x1d4   :  { %2766 = vmatpush3.msra.mxu1 %v1578_v19  ;;  %v1633_v19 = vld [vmem:[%s5153_s7 + $0x2e8] sm:$0xff] }
 0x1d5   :  { %3104 = vmatmul.mubr.msk.f32.gmra.mxu1 %vm571_vm4, %v3725_v62  ;;  %2767 = vmatprep.subr.mxu1 %v1593_v20  ;;  %v1590_v62 = vld [vmem:[%s5153_s7 + $0x190] sm:$0xff]  ;;  %v1665_v20 = vld [vmem:[%s5153_s7 + $0x3e8] sm:$0xff] }
 0x1d6   :  { %3106 = vmatprep.mubr.msk.f32.mxu1 %vm3225_vm0, %v3224_v5  ;;  %2768 = vmatpush3.msra.mxu1 %v1577_v21 }
 0x1d7   :  { %2769 = vmatprep.subr.mxu1 %v1592_v53 }
 0x1d8   :  { %2770 = vmatpush3.msra.mxu1 %v1576_v22 }
 0x1d9   :  { %3107 = vmatmul.mubr.msk.f32.gmra.mxu1 %vm571_vm4, %v3750_v9  ;;  %2771 = vmatprep.subr.mxu1 %v1591_v26  ;;  %v1588_v9 = vld [vmem:[%s5153_s7 + $0x180] sm:$0xff] }
 0x1da   :  { %3109 = vmatprep.mubr.msk.f32.mxu1 %vm3225_vm0, %v3224_v5  ;;  %2772 = vmatpush3.msra.mxu1 %v1575_v27 }
 0x1db   :  { %2773 = vmatprep.subr.mxu1 %v1590_v62 }
 0x1dc   :  { %2774 = vmatpush3.msra.mxu1 %v1574_v28 }
 0x1dd   :  { %3110 = vmatmul.mubr.msk.f32.gmra.mxu1 %vm571_vm4, %v3770_v18  ;;  %2775 = vmatprep.subr.mxu1 %v1589_v30  ;;  %v526_v18 = vlaneseq }
 0x1de   :  { %3112 = vmatprep.mubr.msk.f32.mxu1 %vm3225_vm0, %v3224_v5  ;;  %2776 = vmatpush3.msra.mxu1 %v1573_v31 }
 0x1df   :  { %2777 = vmatprep.subr.mxu1 %v1588_v9 }
 0x1e0   :  { %2778 = vmatpush3.msra.mxu1 %v1572_v32  ;;  %v1617_v32 = vld [vmem:[%s5153_s7 + $0x268] sm:$0xff] }
 0x1e1   :  { %3113 = vmatmul.mubr.msk.f32.gmra.mxu1 %vm571_vm4, %v3792_v29  ;;  %2901 = vmatprep.subr.mxu1 %v1667_v34  ;;  %v4309_v29 = vshrl.u32 %v526_v18, 7  ;;  %v1649_v34 = vld [vmem:[%s5153_s7 + $0x368] sm:$0xff] }
 0x1e2   :  { %3115 = vmatprep.mubr.msk.f32.mxu1 %vm3225_vm0, %v3224_v5 }
 0x1e5   :  { %3116 = vmatmul.mubr.msk.f32.gmra.mxu1 %vm571_vm4, %v3814_v38  ;;  %v528_v38 = vsub.s32 0, %v4309_v29 }
 0x1e6   :  { %3118 = vmatprep.mubr.msk.f32.mxu1 %vm3225_vm0, %v3224_v5 }
 0x1e9   :  { %3119 = vmatmul.mubr.msk.f32.gmra.mxu1 %vm571_vm4, %v3836_v47  ;;  %v536_v47 = vsub.s32 2, %v4309_v29 }
 0x1ea   :  { %3121 = vmatprep.mubr.msk.f32.mxu1 %vm3225_vm0, %v3224_v5 }
 0x1ed   :  { %3122 = vmatmul.mubr.msk.f32.gmra.mxu1 %vm571_vm4, %v3857_v54  ;;  %v4316_v54 = vld [vmem:[%s5154_s6] sm:$0xff] }
 0x1ee   :  { %3124 = vmatprep.mubr.msk.f32.mxu1 %vm3225_vm0, %v3224_v5  ;;  %v4321_v35 = vrot.slane %v4316_v54, %v528_v38 }
 0x1f1   :  { %3125 = vmatmul.mubr.msk.f32.gmra.mxu1 %vm571_vm4, %v3878_v59  ;;  %v532_v59 = vsub.s32 1, %v4309_v29 }
 0x1f2   :  { %3127 = vmatprep.mubr.msk.f32.mxu1 %vm3225_vm0, %v3224_v5 }
 0x1f3   :  { %v4327_v36 = vrot.slane %v4316_v54, %v532_v59  ;;  %v1664_v59 = vld [vmem:[%s5153_s7 + $0x3e0] sm:$0xff] }
 0x1f5   :  { %3128 = vmatmul.mubr.msk.f32.gmra.mxu1 %vm571_vm4, %v3893_v63  ;;  %v540_v63 = vsub.s32 3, %v4309_v29 }
 0x1f6   :  { %3130 = vmatprep.mubr.msk.f32.mxu1 %vm3225_vm0, %v3224_v5 }
 0x1f7   :  { %v4330_v37 = vrot.slane %v4316_v54, %v540_v63 }
 0x1f9   :  { %3131 = vmatmul.mubr.msk.f32.gmra.mxu1 %vm571_vm4, %v3906_v2  ;;  %v4324_v2 = vrot.slane %v4316_v54, %v536_v47  ;;  %v1632_v47 = vld [vmem:[%s5153_s7 + $0x2e0] sm:$0xff] }
 0x209   :  { %v711_v39 = vpop.f32.mrf.mxu1  ;;  %v866_v40 = vpop.f32.mrf.mxu0 }
 0x20a   :  { %v712_v41 = vadd.f32 %v711_v39, %v4321_v35  ;;  %v867_v42 = vadd.f32 %v866_v40, %v4324_v2 }
 0x20b   :  { %v713_v44 = vpop.f32.mrf.mxu1  ;;  %v868_v45 = vpop.f32.mrf.mxu0 }
 0x20c   :  { %v714_v46 = vadd.f32 %v713_v44, %v4327_v36  ;;  %v869_v48 = vadd.f32 %v868_v45, %v4330_v37  ;;  %v1405_v55 = vmax.f32 %v712_v41, 0.0  ;;  %v1407_v56 = vmax.f32 %v867_v42, 0.0 }
 0x20d   :  { %v717_v49 = vpop.f32.mrf.mxu1  ;;  %v872_v50 = vpop.f32.mrf.mxu0 }
 0x20e   :  { %v1406_v51 = vmax.f32 %v714_v46, 0.0  ;;  %v1408_v52 = vmax.f32 %v869_v48, 0.0  ;;  %v718_v23 = vadd.f32 %v717_v49, %v4321_v35  ;;  %v873_v57 = vadd.f32 %v872_v50, %v4324_v2  ;;  %v1616_v49 = vld [vmem:[%s5153_s7 + $0x260] sm:$0xff] }
 0x20f   :  { %v719_v58 = vpop.f32.mrf.mxu1  ;;  %v874_v60 = vpop.f32.mrf.mxu0  ;;  %v1648_v50 = vld [vmem:[%s5153_s7 + $0x360] sm:$0xff] }
 0x210   :  { %v720_v0 = vadd.f32 %v719_v58, %v4327_v36  ;;  %v875_v1 = vadd.f32 %v874_v60, %v4330_v37  ;;  %1755 = vmatprep.mubr.f32.mxu0 %v1406_v51  ;;  %1895 = vmatprep.mubr.f32.mxu1 %v1408_v52  ;;  %v1414_v8 = vmax.f32 %v718_v23, 0.0  ;;  %v1416_v25 = vmax.f32 %v873_v57, 0.0  ;;  %v1663_v23 = vld [vmem:[%s5153_s7 + $0x3d8] sm:$0xff] }
 0x211   :  { %v723_v4 = vpop.f32.mrf.mxu1  ;;  %v878_v15 = vpop.f32.mrf.mxu0  ;;  %1756 = vmatmul.mubr.f32.vlgmr.msra.gmra.mxu0 %v1405_v55  ;;  %1896 = vmatmul.mubr.f32.vlgmr.msra.gmra.mxu1 %v1407_v56  ;;  %v1631_v56 = vld [vmem:[%s5153_s7 + $0x2d8] sm:$0xff] }
 0x212   :  { %v1415_v6 = vmax.f32 %v720_v0, 0.0  ;;  %v1417_v7 = vmax.f32 %v875_v1, 0.0  ;;  %2825 = vmatpush3.msra.mxu0 %v1619_v61  ;;  %2902 = vmatpush3.msra.mxu1 %v1651_v24  ;;  %v724_v10 = vadd.f32 %v723_v4, %v4321_v35  ;;  %v879_v12 = vadd.f32 %v878_v15, %v4324_v2  ;;  %v1615_v24 = vld [vmem:[%s5153_s7 + $0x258] sm:$0xff]  ;;  %v1630_v4 = vld [vmem:[%s5153_s7 + $0x2d0] sm:$0xff] }
 0x213   :  { %v725_v13 = vpop.f32.mrf.mxu1  ;;  %v880_v33 = vpop.f32.mrf.mxu0  ;;  %2826 = vmatprep.subr.mxu0 %v1634_v11  ;;  %2903 = vmatprep.subr.mxu1 %v1666_v3 }
 0x214   :  { %v726_v17 = vadd.f32 %v725_v13, %v4327_v36  ;;  %v881_v43 = vadd.f32 %v880_v33, %v4330_v37  ;;  %1760 = vmatprep.mubr.f32.mxu0 %v1415_v6  ;;  %1900 = vmatprep.mubr.f32.mxu1 %v1417_v7  ;;  %v1423_v27 = vmax.f32 %v724_v10, 0.0  ;;  %v1425_v62 = vmax.f32 %v879_v12, 0.0  ;;  %v1647_v10 = vld [vmem:[%s5153_s7 + $0x358] sm:$0xff] }
 0x215   :  { %v729_v21 = vpop.f32.mrf.mxu1  ;;  %v884_v53 = vpop.f32.mrf.mxu0  ;;  %1761 = vmatmul.mubr.f32.gmra.mxu0 %v1414_v8  ;;  %1901 = vmatmul.mubr.f32.gmra.mxu1 %v1416_v25  ;;  %v1614_v25 = vld [vmem:[%s5153_s7 + $0x250] sm:$0xff] }
 0x216   :  { %v1424_v22 = vmax.f32 %v726_v17, 0.0  ;;  %v1426_v26 = vmax.f32 %v881_v43, 0.0  ;;  %2827 = vmatpush3.msra.mxu0 %v1618_v14  ;;  %2904 = vmatpush3.msra.mxu1 %v1650_v16  ;;  %v730_v28 = vadd.f32 %v729_v21, %v4321_v35  ;;  %v885_v30 = vadd.f32 %v884_v53, %v4324_v2  ;;  %v1629_v16 = vld [vmem:[%s5153_s7 + $0x2c8] sm:$0xff]  ;;  %v1662_v21 = vld [vmem:[%s5153_s7 + $0x3d0] sm:$0xff] }
 0x217   :  { %v731_v31 = vpop.f32.mrf.mxu1  ;;  %v886_v9 = vpop.f32.mrf.mxu0  ;;  %2828 = vmatprep.subr.mxu0 %v1633_v19  ;;  %2905 = vmatprep.subr.mxu1 %v1665_v20 }
 0x218   :  { %v732_v18 = vadd.f32 %v731_v31, %v4327_v36  ;;  %v887_v38 = vadd.f32 %v886_v9, %v4330_v37  ;;  %1765 = vmatprep.mubr.f32.mxu0 %v1424_v22  ;;  %1905 = vmatprep.mubr.f32.mxu1 %v1426_v26  ;;  %v1432_v42 = vmax.f32 %v730_v28, 0.0  ;;  %v1434_v44 = vmax.f32 %v885_v30, 0.0  ;;  %v1646_v28 = vld [vmem:[%s5153_s7 + $0x350] sm:$0xff] }
 0x219   :  { %v735_v63 = vpop.f32.mrf.mxu1  ;;  %v890_v39 = vpop.f32.mrf.mxu0  ;;  %1766 = vmatmul.mubr.f32.gmra.mxu0 %v1423_v27  ;;  %1906 = vmatmul.mubr.f32.gmra.mxu1 %v1425_v62  ;;  %v1613_v62 = vld [vmem:[%s5153_s7 + $0x248] sm:$0xff] }
 0x21a   :  { %v1433_v40 = vmax.f32 %v732_v18, 0.0  ;;  %v1435_v41 = vmax.f32 %v887_v38, 0.0  ;;  %2829 = vmatpush3.msra.mxu0 %v1617_v32  ;;  %2906 = vmatpush3.msra.mxu1 %v1649_v34  ;;  %v891_v45 = vadd.f32 %v890_v39, %v4324_v2  ;;  %v736_v51 = vadd.f32 %v735_v63, %v4321_v35  ;;  %v1628_v34 = vld [vmem:[%s5153_s7 + $0x2c0] sm:$0xff]  ;;  %v1661_v63 = vld [vmem:[%s5153_s7 + $0x3c8] sm:$0xff] }
 0x21b   :  { %v737_v46 = vpop.f32.mrf.mxu1  ;;  %v892_v48 = vpop.f32.mrf.mxu0  ;;  %2830 = vmatprep.subr.mxu0 %v1632_v47  ;;  %2907 = vmatprep.subr.mxu1 %v1664_v59 }
 0x21c   :  { %v738_v52 = vadd.f32 %v737_v46, %v4327_v36  ;;  %v893_v55 = vadd.f32 %v892_v48, %v4330_v37  ;;  %1770 = vmatprep.mubr.f32.mxu0 %v1433_v40  ;;  %1910 = vmatprep.mubr.f32.mxu1 %v1435_v41  ;;  %v1443_v0 = vmax.f32 %v891_v45, 0.0  ;;  %v1441_v15 = vmax.f32 %v736_v51, 0.0  ;;  %v1645_v45 = vld [vmem:[%s5153_s7 + $0x348] sm:$0xff]  ;;  %v1627_v51 = vld [vmem:[%s5153_s7 + $0x2b8] sm:$0xff] }
 0x21d   :  { %v741_v57 = vpop.f32.mrf.mxu1  ;;  %v896_v58 = vpop.f32.mrf.mxu0  ;;  %1771 = vmatmul.mubr.f32.gmra.mxu0 %v1432_v42  ;;  %1911 = vmatmul.mubr.f32.gmra.mxu1 %v1434_v44  ;;  %v1612_v44 = vld [vmem:[%s5153_s7 + $0x240] sm:$0xff] }
 0x21e   :  { %v1442_v60 = vmax.f32 %v738_v52, 0.0  ;;  %v1444_v61 = vmax.f32 %v893_v55, 0.0  ;;  %2831 = vmatpush3.msra.mxu0 %v1616_v49  ;;  %2908 = vmatpush3.msra.mxu1 %v1648_v50  ;;  %v897_v1 = vadd.f32 %v896_v58, %v4324_v2  ;;  %v742_v6 = vadd.f32 %v741_v57, %v4321_v35  ;;  %v1660_v57 = vld [vmem:[%s5153_s7 + $0x3c0] sm:$0xff] }
 0x21f   :  { %v743_v11 = vpop.f32.mrf.mxu1  ;;  %v898_v3 = vpop.f32.mrf.mxu0  ;;  %2832 = vmatprep.subr.mxu0 %v1631_v56  ;;  %2909 = vmatprep.subr.mxu1 %v1663_v23 }
 0x220   :  { %v744_v7 = vadd.f32 %v743_v11, %v4327_v36  ;;  %v899_v8 = vadd.f32 %v898_v3, %v4330_v37  ;;  %1775 = vmatprep.mubr.f32.mxu0 %v1442_v60  ;;  %1915 = vmatprep.mubr.f32.mxu1 %v1444_v61  ;;  %v1452_v17 = vmax.f32 %v897_v1, 0.0  ;;  %v1450_v53 = vmax.f32 %v742_v6, 0.0  ;;  %v1644_v1 = vld [vmem:[%s5153_s7 + $0x340] sm:$0xff]  ;;  %v1626_v6 = vld [vmem:[%s5153_s7 + $0x2b0] sm:$0xff] }
 0x221   :  { %2833 = vmatpush3.msra.mxu0 %v1615_v24  ;;  %v747_v12 = vpop.f32.mrf.mxu1  ;;  %v902_v13 = vpop.f32.mrf.mxu0  ;;  %1916 = vmatmul.mubr.f32.gmra.mxu1 %v1443_v0  ;;  %v1611_v0 = vld [vmem:[%s5153_s7 + $0x238] sm:$0xff] }
 0x222   :  { %v1451_v33 = vmax.f32 %v744_v7, 0.0  ;;  %v1453_v14 = vmax.f32 %v899_v8, 0.0  ;;  %1776 = vmatmul.mubr.f32.gmra.mxu0 %v1441_v15  ;;  %2834 = vmatprep.subr.mxu0 %v1630_v4  ;;  %v903_v43 = vadd.f32 %v902_v13, %v4324_v2  ;;  %v748_v22 = vadd.f32 %v747_v12, %v4321_v35  ;;  %v1659_v12 = vld [vmem:[%s5153_s7 + $0x3b8] sm:$0xff] }
 0x223   :  { %v749_v19 = vpop.f32.mrf.mxu1  ;;  %v904_v20 = vpop.f32.mrf.mxu0  ;;  %2835 = vmatpush3.msra.mxu0 %v1614_v25  ;;  %2910 = vmatpush3.msra.mxu1 %v1647_v10 }
 0x224   :  { %v750_v26 = vadd.f32 %v749_v19, %v4327_v36  ;;  %v905_v27 = vadd.f32 %v904_v20, %v4330_v37  ;;  %1780 = vmatprep.mubr.f32.mxu0 %v1451_v33  ;;  %1920 = vmatprep.mubr.f32.mxu1 %v1453_v14  ;;  %v1461_v18 = vmax.f32 %v903_v43, 0.0  ;;  %v1459_v39 = vmax.f32 %v748_v22, 0.0  ;;  %v1643_v43 = vld [vmem:[%s5153_s7 + $0x338] sm:$0xff]  ;;  %v1625_v22 = vld [vmem:[%s5153_s7 + $0x2a8] sm:$0xff] }
 0x225   :  { %v753_v30 = vpop.f32.mrf.mxu1  ;;  %v908_v31 = vpop.f32.mrf.mxu0  ;;  %1921 = vmatmul.mubr.f32.gmra.mxu1 %v1452_v17  ;;  %2836 = vmatprep.subr.mxu0 %v1629_v16  ;;  %v1610_v17 = vld [vmem:[%s5153_s7 + $0x230] sm:$0xff] }
 0x226   :  { %v1460_v9 = vmax.f32 %v750_v26, 0.0  ;;  %v1462_v32 = vmax.f32 %v905_v27, 0.0  ;;  %1781 = vmatmul.mubr.f32.gmra.mxu0 %v1450_v53  ;;  %2911 = vmatprep.subr.mxu1 %v1662_v21  ;;  %v909_v38 = vadd.f32 %v908_v31, %v4324_v2  ;;  %v754_v40 = vadd.f32 %v753_v30, %v4321_v35  ;;  %v1658_v30 = vld [vmem:[%s5153_s7 + $0x3b0] sm:$0xff] }
 0x227   :  { %v755_v47 = vpop.f32.mrf.mxu1  ;;  %v910_v59 = vpop.f32.mrf.mxu0  ;;  %2837 = vmatpush3.msra.mxu0 %v1613_v62  ;;  %2912 = vmatpush3.msra.mxu1 %v1646_v28 }
 0x228   :  { %v756_v41 = vadd.f32 %v755_v47, %v4327_v36  ;;  %v911_v42 = vadd.f32 %v910_v59, %v4330_v37  ;;  %1785 = vmatprep.mubr.f32.mxu0 %v1460_v9  ;;  %1925 = vmatprep.mubr.f32.mxu1 %v1462_v32  ;;  %v1470_v52 = vmax.f32 %v909_v38, 0.0  ;;  %v1468_v58 = vmax.f32 %v754_v40, 0.0  ;;  %v1642_v38 = vld [vmem:[%s5153_s7 + $0x330] sm:$0xff]  ;;  %v1624_v40 = vld [vmem:[%s5153_s7 + $0x2a0] sm:$0xff] }
 0x229   :  { %v759_v46 = vpop.f32.mrf.mxu1  ;;  %v914_v48 = vpop.f32.mrf.mxu0  ;;  %1926 = vmatmul.mubr.f32.gmra.mxu1 %v1461_v18  ;;  %2838 = vmatprep.subr.mxu0 %v1628_v34  ;;  %v1609_v18 = vld [vmem:[%s5153_s7 + $0x228] sm:$0xff] }
 0x22a   :  { %v1469_v49 = vmax.f32 %v756_v41, 0.0  ;;  %v1471_v50 = vmax.f32 %v911_v42, 0.0  ;;  %1786 = vmatmul.mubr.f32.gmra.mxu0 %v1459_v39  ;;  %2913 = vmatprep.subr.mxu1 %v1661_v63  ;;  %v915_v55 = vadd.f32 %v914_v48, %v4324_v2  ;;  %v760_v60 = vadd.f32 %v759_v46, %v4321_v35  ;;  %v1657_v46 = vld [vmem:[%s5153_s7 + $0x3a8] sm:$0xff] }
 0x22b   :  { %v761_v56 = vpop.f32.mrf.mxu1  ;;  %v916_v23 = vpop.f32.mrf.mxu0  ;;  %2839 = vmatpush3.msra.mxu0 %v1612_v44  ;;  %2914 = vmatpush3.msra.mxu1 %v1645_v45 }
 0x22c   :  { %v762_v61 = vadd.f32 %v761_v56, %v4327_v36  ;;  %v917_v24 = vadd.f32 %v916_v23, %v4330_v37  ;;  %1790 = vmatprep.mubr.f32.mxu0 %v1469_v49  ;;  %1930 = vmatprep.mubr.f32.mxu1 %v1471_v50  ;;  %v1479_v7 = vmax.f32 %v915_v55, 0.0  ;;  %v1477_v13 = vmax.f32 %v760_v60, 0.0  ;;  %v1641_v55 = vld [vmem:[%s5153_s7 + $0x328] sm:$0xff]  ;;  %v1623_v60 = vld [vmem:[%s5153_s7 + $0x298] sm:$0xff] }
 0x22d   :  { %v765_v11 = vpop.f32.mrf.mxu1  ;;  %v920_v3 = vpop.f32.mrf.mxu0  ;;  %1931 = vmatmul.mubr.f32.gmra.mxu1 %v1470_v52  ;;  %2840 = vmatprep.subr.mxu0 %v1627_v51  ;;  %v1608_v52 = vld [vmem:[%s5153_s7 + $0x220] sm:$0xff] }
 0x22e   :  { %v1478_v4 = vmax.f32 %v762_v61, 0.0  ;;  %v1480_v15 = vmax.f32 %v917_v24, 0.0  ;;  %1791 = vmatmul.mubr.f32.gmra.mxu0 %v1468_v58  ;;  %2915 = vmatprep.subr.mxu1 %v1660_v57  ;;  %v921_v8 = vadd.f32 %v920_v3, %v4324_v2  ;;  %v766_v33 = vadd.f32 %v765_v11, %v4321_v35  ;;  %v1656_v11 = vld [vmem:[%s5153_s7 + $0x3a0] sm:$0xff] }
 0x22f   :  { %v767_v25 = vpop.f32.mrf.mxu1  ;;  %v922_v10 = vpop.f32.mrf.mxu0  ;;  %2841 = vmatpush3.msra.mxu0 %v1611_v0  ;;  %2916 = vmatpush3.msra.mxu1 %v1644_v1 }
 0x230   :  { %v768_v14 = vadd.f32 %v767_v25, %v4327_v36  ;;  %v923_v16 = vadd.f32 %v922_v10, %v4330_v37  ;;  %1795 = vmatprep.mubr.f32.mxu0 %v1478_v4  ;;  %1935 = vmatprep.mubr.f32.mxu1 %v1480_v15  ;;  %v1488_v26 = vmax.f32 %v921_v8, 0.0  ;;  %v1486_v31 = vmax.f32 %v766_v33, 0.0  ;;  %v1640_v8 = vld [vmem:[%s5153_s7 + $0x320] sm:$0xff]  ;;  %v1622_v33 = vld [vmem:[%s5153_s7 + $0x290] sm:$0xff] }
 0x231   :  { %v771_v19 = vpop.f32.mrf.mxu1  ;;  %v926_v20 = vpop.f32.mrf.mxu0  ;;  %1936 = vmatmul.mubr.f32.gmra.mxu1 %v1479_v7  ;;  %2842 = vmatprep.subr.mxu0 %v1626_v6  ;;  %v1607_v7 = vld [vmem:[%s5153_s7 + $0x218] sm:$0xff] }
 0x232   :  { %v1487_v21 = vmax.f32 %v768_v14, 0.0  ;;  %v1489_v53 = vmax.f32 %v923_v16, 0.0  ;;  %1796 = vmatmul.mubr.f32.gmra.mxu0 %v1477_v13  ;;  %2917 = vmatprep.subr.mxu1 %v1659_v12  ;;  %v927_v27 = vadd.f32 %v926_v20, %v4324_v2  ;;  %v772_v9 = vadd.f32 %v771_v19, %v4321_v35  ;;  %v1655_v20 = vld [vmem:[%s5153_s7 + $0x398] sm:$0xff] }
 0x233   :  { %v773_v62 = vpop.f32.mrf.mxu1  ;;  %v928_v28 = vpop.f32.mrf.mxu0  ;;  %2843 = vmatpush3.msra.mxu0 %v1610_v17  ;;  %2918 = vmatpush3.msra.mxu1 %v1643_v43  ;;  %v544_v14 = vsub.s32 4, %v4309_v29 }
 0x234   :  { %v774_v32 = vadd.f32 %v773_v62, %v4327_v36  ;;  %v929_v34 = vadd.f32 %v928_v28, %v4330_v37  ;;  %1800 = vmatprep.mubr.f32.mxu0 %v1487_v21  ;;  %1940 = vmatprep.mubr.f32.mxu1 %v1489_v53  ;;  %v1497_v41 = vmax.f32 %v927_v27, 0.0  ;;  %v1495_v48 = vmax.f32 %v772_v9, 0.0  ;;  %v1606_v28 = vld [vmem:[%s5153_s7 + $0x210] sm:$0xff] }
 0x235   :  { %v777_v47 = vpop.f32.mrf.mxu1  ;;  %v932_v59 = vpop.f32.mrf.mxu0  ;;  %1941 = vmatmul.mubr.f32.gmra.mxu1 %v1488_v26  ;;  %2844 = vmatprep.subr.mxu0 %v1625_v22  ;;  %v548_v21 = vsub.s32 5, %v4309_v29  ;;  %v556_v53 = vsub.s32 7, %v4309_v29 }
 0x236   :  { %v1496_v63 = vmax.f32 %v774_v32, 0.0  ;;  %v1498_v39 = vmax.f32 %v929_v34, 0.0  ;;  %1801 = vmatmul.mubr.f32.gmra.mxu0 %v1486_v31  ;;  %2919 = vmatprep.subr.mxu1 %v1658_v30  ;;  %v933_v42 = vadd.f32 %v932_v59, %v4324_v2  ;;  %v778_v49 = vadd.f32 %v777_v47, %v4321_v35  ;;  %v1639_v30 = vld [vmem:[%s5153_s7 + $0x318] sm:$0xff]  ;;  %v1621_v47 = vld [vmem:[%s5153_s7 + $0x288] sm:$0xff] }
 0x237   :  { %v779_v44 = vpop.f32.mrf.mxu1  ;;  %v934_v45 = vpop.f32.mrf.mxu0  ;;  %2845 = vmatpush3.msra.mxu0 %v1609_v18  ;;  %2920 = vmatpush3.msra.mxu1 %v1642_v38  ;;  %v552_v32 = vsub.s32 6, %v4309_v29  ;;  %v4549_v38 = vrot.slane %v4316_v54, %v544_v14  ;;  %v4556_v29 = vrot.slane %v4316_v54, %v548_v21  ;;  %v1683_v14 = vld [vmem:[%s5153_s7 + $0x478] sm:$0xff] }
 0x238   :  { %v780_v50 = vadd.f32 %v779_v44, %v4327_v36  ;;  %v935_v51 = vadd.f32 %v934_v45, %v4330_v37  ;;  %1805 = vmatprep.mubr.f32.mxu0 %v1496_v63  ;;  %1945 = vmatprep.mubr.f32.mxu1 %v1498_v39  ;;  %v1506_v61 = vmax.f32 %v933_v42, 0.0  ;;  %v1504_v3 = vmax.f32 %v778_v49, 0.0  ;;  %v1654_v42 = vld [vmem:[%s5153_s7 + $0x390] sm:$0xff] }
 0x239   :  { %v783_v56 = vpop.f32.mrf.mxu1  ;;  %v938_v23 = vpop.f32.mrf.mxu0  ;;  %1946 = vmatmul.mubr.f32.gmra.mxu1 %v1497_v41  ;;  %2846 = vmatprep.subr.mxu0 %v1624_v40  ;;  %v4559_v41 = vrot.slane %v4316_v54, %v556_v53  ;;  %v1638_v49 = vld [vmem:[%s5153_s7 + $0x310] sm:$0xff] }
 0x23a   :  { %v1505_v57 = vmax.f32 %v780_v50, 0.0  ;;  %v1507_v58 = vmax.f32 %v935_v51, 0.0  ;;  %1806 = vmatmul.mubr.f32.gmra.mxu0 %v1495_v48  ;;  %2921 = vmatprep.subr.mxu1 %v1657_v46  ;;  %v939_v24 = vadd.f32 %v938_v23, %v4324_v2  ;;  %v784_v4 = vadd.f32 %v783_v56, %v4321_v35  ;;  %v1605_v48 = vld [vmem:[%s5153_s7 + $0x208] sm:$0xff] }
 0x23b   :  { %v785_v0 = vpop.f32.mrf.mxu1  ;;  %v940_v1 = vpop.f32.mrf.mxu0  ;;  %2847 = vmatpush3.msra.mxu0 %v1608_v52  ;;  %2922 = vmatpush3.msra.mxu1 %v1641_v55  ;;  %v4574_v51 = vrot.slane %v4316_v54, %v552_v32  ;;  %v1653_v54 = vld [vmem:[%s5153_s7 + $0x388] sm:$0xff] }
 0x23c   :  { %v786_v15 = vadd.f32 %v785_v0, %v4327_v36  ;;  %v941_v6 = vadd.f32 %v940_v1, %v4330_v37  ;;  %1810 = vmatprep.mubr.f32.mxu0 %v1505_v57  ;;  %1950 = vmatprep.mubr.f32.mxu1 %v1507_v58  ;;  %v1515_v16 = vmax.f32 %v939_v24, 0.0  ;;  %v1513_v22 = vmax.f32 %v784_v4, 0.0  ;;  %v1604_v24 = vld [vmem:[%s5153_s7 + $0x200] sm:$0xff]  ;;  %v1637_v0 = vld [vmem:[%s5153_s7 + $0x308] sm:$0xff] }
 0x23d   :  { %v789_v25 = vpop.f32.mrf.mxu1  ;;  %v944_v10 = vpop.f32.mrf.mxu0  ;;  %1951 = vmatmul.mubr.f32.gmra.mxu1 %v1506_v61  ;;  %2848 = vmatprep.subr.mxu0 %v1623_v60  ;;  %v1652_v4 = vld [vmem:[%s5153_s7 + $0x380] sm:$0xff] }
 0x23e   :  { %v1514_v12 = vmax.f32 %v786_v15, 0.0  ;;  %v1516_v13 = vmax.f32 %v941_v6, 0.0  ;;  %1811 = vmatmul.mubr.f32.gmra.mxu0 %v1504_v3  ;;  %2923 = vmatprep.subr.mxu1 %v1656_v11  ;;  %v945_v17 = vadd.f32 %v944_v10, %v4324_v2  ;;  %v790_v26 = vadd.f32 %v789_v25, %v4321_v35 }
 0x23f   :  { %2849 = vmatpush3.msra.mxu0 %v1607_v7  ;;  %v791_v43 = vpop.f32.mrf.mxu1  ;;  %v946_v19 = vpop.f32.mrf.mxu0  ;;  %2924 = vmatpush3.msra.mxu1 %v1640_v8  ;;  %v1636_v7 = vld [vmem:[%s5153_s7 + $0x300] sm:$0xff] }
 0x240   :  { %v792_v27 = vadd.f32 %v791_v43, %v4327_v36  ;;  %v947_v62 = vadd.f32 %v946_v19, %v4330_v37  ;;  %1815 = vmatprep.mubr.f32.mxu0 %v1514_v12  ;;  %1955 = vmatprep.mubr.f32.mxu1 %v1516_v13  ;;  %v1524_v59 = vmax.f32 %v945_v17, 0.0  ;;  %v1522_v44 = vmax.f32 %v790_v26, 0.0 }
 0x241   :  { %v795_v31 = vpop.f32.mrf.mxu1  ;;  %v950_v9 = vpop.f32.mrf.mxu0  ;;  %1956 = vmatmul.mubr.f32.gmra.mxu1 %v1515_v16  ;;  %2850 = vmatprep.subr.mxu0 %v1622_v33 }
 0x242   :  { %v1523_v34 = vmax.f32 %v792_v27, 0.0  ;;  %v1525_v18 = vmax.f32 %v947_v62, 0.0  ;;  %1816 = vmatmul.mubr.f32.gmra.mxu0 %v1513_v22  ;;  %2925 = vmatprep.subr.mxu1 %v1655_v20  ;;  %v951_v63 = vadd.f32 %v950_v9, %v4324_v2  ;;  %v796_v45 = vadd.f32 %v795_v31, %v4321_v35 }
 0x243   :  { %2851 = vmatpush3.msra.mxu0 %v1606_v28  ;;  %v797_v39 = vpop.f32.mrf.mxu1  ;;  %v952_v40 = vpop.f32.mrf.mxu0  ;;  %2926 = vmatpush3.msra.mxu1 %v1639_v30  ;;  %v1682_v30 = vld [vmem:[%s5153_s7 + $0x470] sm:$0xff] }
 0x244   :  { %v798_v46 = vadd.f32 %v797_v39, %v4327_v36  ;;  %v953_v2 = vadd.f32 %v952_v40, %v4330_v37  ;;  %1820 = vmatprep.mubr.f32.mxu0 %v1523_v34  ;;  %1960 = vmatprep.mubr.f32.mxu1 %v1525_v18  ;;  %v1620_v37 = vld [vmem:[%s5153_s7 + $0x280] sm:$0xff]  ;;  %v1533_v55 = vmax.f32 %v951_v63, 0.0  ;;  %v1531_v57 = vmax.f32 %v796_v45, 0.0  ;;  %v1681_v45 = vld [vmem:[%s5153_s7 + $0x468] sm:$0xff] }
 0x245   :  { %v1021_v50 = vpop.f32.mrf.mxu1  ;;  %v1176_v52 = vpop.f32.mrf.mxu0  ;;  %1961 = vmatmul.mubr.f32.gmra.mxu1 %v1524_v59  ;;  %2852 = vmatprep.subr.mxu0 %v1621_v47 }
 0x246   :  { %v1532_v35 = vmax.f32 %v798_v46, 0.0  ;;  %v1534_v36 = vmax.f32 %v953_v2, 0.0  ;;  %1821 = vmatmul.mubr.f32.gmra.mxu0 %v1522_v44  ;;  %2927 = vmatprep.subr.mxu1 %v1654_v42  ;;  %v1022_v58 = vadd.f32 %v1021_v50, %v4549_v38  ;;  %v1177_v1 = vadd.f32 %v1176_v52, %v4574_v51 }
 0x247   :  { %2853 = vmatpush3.msra.mxu0 %v1605_v48  ;;  %v1023_v56 = vpop.f32.mrf.mxu1  ;;  %v1178_v23 = vpop.f32.mrf.mxu0  ;;  %2928 = vmatpush3.msra.mxu1 %v1638_v49 }
 0x248   :  { %v1024_v60 = vadd.f32 %v1023_v56, %v4556_v29  ;;  %v1179_v61 = vadd.f32 %v1178_v23, %v4559_v41  ;;  %1825 = vmatprep.mubr.f32.mxu0 %v1532_v35  ;;  %1965 = vmatprep.mubr.f32.mxu1 %v1534_v36  ;;  %v1409_v10 = vmax.f32 %v1022_v58, 0.0  ;;  %v1411_v16 = vmax.f32 %v1177_v1, 0.0  ;;  %v1679_v1 = vld [vmem:[%s5153_s7 + $0x458] sm:$0xff] }
 0x249   :  { %v1027_v11 = vpop.f32.mrf.mxu1  ;;  %v1182_v3 = vpop.f32.mrf.mxu0  ;;  %1966 = vmatmul.mubr.f32.gmra.mxu1 %v1533_v55  ;;  %2854 = vmatprep.subr.mxu0 %v1620_v37 }
 0x24a   :  { %v1410_v15 = vmax.f32 %v1024_v60, 0.0  ;;  %v1412_v6 = vmax.f32 %v1179_v61, 0.0  ;;  %1826 = vmatmul.mubr.f32.gmra.mxu0 %v1531_v57  ;;  %2929 = vmatprep.subr.mxu1 %v1653_v54  ;;  %v1028_v12 = vadd.f32 %v1027_v11, %v4549_v38  ;;  %v1183_v17 = vadd.f32 %v1182_v3, %v4574_v51  ;;  %v1680_v54 = vld [vmem:[%s5153_s7 + $0x460] sm:$0xff] }
 0x24b   :  { %2855 = vmatpush3.msra.mxu0 %v1604_v24  ;;  %2930 = vmatpush3.msra.mxu1 %v1637_v0  ;;  %v1029_v8 = vpop.f32.mrf.mxu1  ;;  %v1184_v25 = vpop.f32.mrf.mxu0 }
 0x24c   :  { %v1030_v13 = vadd.f32 %v1029_v8, %v4556_v29  ;;  %v1185_v33 = vadd.f32 %v1184_v25, %v4559_v41  ;;  %2931 = vmatprep.subr.mxu1 %v1652_v4  ;;  %2035 = vmatprep.mubr.f32.mxu0 %v1410_v15  ;;  %v1418_v26 = vmax.f32 %v1028_v12, 0.0  ;;  %v1420_v31 = vmax.f32 %v1183_v17, 0.0  ;;  %v1678_v8 = vld [vmem:[%s5153_s7 + $0x450] sm:$0xff] }
 0x24d   :  { %2932 = vmatpush3.msra.mxu1 %v1636_v7  ;;  %2175 = vmatprep.mubr.f32.mxu1 %v1412_v6  ;;  %v1033_v43 = vpop.f32.mrf.mxu1  ;;  %v1188_v19 = vpop.f32.mrf.mxu0 }
 0x24e   :  { %v1419_v20 = vmax.f32 %v1030_v13, 0.0  ;;  %v1421_v21 = vmax.f32 %v1185_v33, 0.0  ;;  %3133 = vmatprep.subr.mxu0 %v3224_v5  ;;  %2036 = vmatmul.mubr.f32.vlgmr.msra.gmra.mxu0 %v1409_v10  ;;  %v1034_v27 = vadd.f32 %v1033_v43, %v4549_v38  ;;  %v1189_v9 = vadd.f32 %v1188_v19, %v4574_v51 }
 0x24f   :  { %2176 = vmatmul.mubr.f32.vlgmr.msra.gmra.mxu1 %v1411_v16  ;;  %3134 = vmatpush3.msra.mxu0 %v1683_v14  ;;  %v1035_v53 = vpop.f32.mrf.mxu1  ;;  %v1190_v22 = vpop.f32.mrf.mxu0 }
 0x250   :  { %v1036_v62 = vadd.f32 %v1035_v53, %v4556_v29  ;;  %v1191_v28 = vadd.f32 %v1190_v22, %v4559_v41  ;;  %2040 = vmatprep.mubr.f32.mxu0 %v1419_v20  ;;  %2180 = vmatprep.mubr.f32.mxu1 %v1421_v21  ;;  %v1427_v39 = vmax.f32 %v1034_v27, 0.0  ;;  %v1429_v46 = vmax.f32 %v1189_v9, 0.0  ;;  %v1677_v53 = vld [vmem:[%s5153_s7 + $0x448] sm:$0xff] }
 0x251   :  { %3135 = vmatprep.subr.mxu0 %v3224_v5  ;;  %v1039_v32 = vpop.f32.mrf.mxu1  ;;  %v1194_v34 = vpop.f32.mrf.mxu0 }
 0x252   :  { %v1428_v18 = vmax.f32 %v1036_v62, 0.0  ;;  %v1430_v47 = vmax.f32 %v1191_v28, 0.0  ;;  %2041 = vmatmul.mubr.f32.gmra.mxu0 %v1418_v26  ;;  %v1040_v40 = vadd.f32 %v1039_v32, %v4549_v38  ;;  %v1195_v2 = vadd.f32 %v1194_v34, %v4574_v51 }
 0x253   :  { %2181 = vmatmul.mubr.f32.gmra.mxu1 %v1420_v31  ;;  %3136 = vmatpush3.msra.mxu0 %v1682_v30  ;;  %v1041_v59 = vpop.f32.mrf.mxu1  ;;  %v1196_v63 = vpop.f32.mrf.mxu0 }
 0x254   :  { %v1042_v42 = vadd.f32 %v1041_v59, %v4556_v29  ;;  %v1197_v44 = vadd.f32 %v1196_v63, %v4559_v41  ;;  %2045 = vmatprep.mubr.f32.mxu0 %v1428_v18  ;;  %2185 = vmatprep.mubr.f32.mxu1 %v1430_v47  ;;  %v1436_v37 = vmax.f32 %v1040_v40, 0.0  ;;  %v1438_v57 = vmax.f32 %v1195_v2, 0.0  ;;  %v1676_v59 = vld [vmem:[%s5153_s7 + $0x440] sm:$0xff] }
 0x255   :  { %3137 = vmatprep.subr.mxu0 %v3224_v5  ;;  %v1045_v48 = vpop.f32.mrf.mxu1  ;;  %v1200_v49 = vpop.f32.mrf.mxu0 }
 0x256   :  { %v1437_v50 = vmax.f32 %v1042_v42, 0.0  ;;  %v1439_v52 = vmax.f32 %v1197_v44, 0.0  ;;  %2046 = vmatmul.mubr.f32.gmra.mxu0 %v1427_v39  ;;  %v1046_v55 = vadd.f32 %v1045_v48, %v4549_v38  ;;  %v1201_v58 = vadd.f32 %v1200_v49, %v4574_v51 }
 0x257   :  { %2186 = vmatmul.mubr.f32.gmra.mxu1 %v1429_v46  ;;  %3138 = vmatpush3.msra.mxu0 %v1681_v45  ;;  %v1047_v35 = vpop.f32.mrf.mxu1  ;;  %v1202_v36 = vpop.f32.mrf.mxu0 }
 0x258   :  { %v1048_v56 = vadd.f32 %v1047_v35, %v4556_v29  ;;  %v1203_v23 = vadd.f32 %v1202_v36, %v4559_v41  ;;  %2050 = vmatprep.mubr.f32.mxu0 %v1437_v50  ;;  %2190 = vmatprep.mubr.f32.mxu1 %v1439_v52  ;;  %v1445_v4 = vmax.f32 %v1046_v55, 0.0  ;;  %v1447_v25 = vmax.f32 %v1201_v58, 0.0  ;;  %v1675_v35 = vld [vmem:[%s5153_s7 + $0x438] sm:$0xff] }
 0x259   :  { %3139 = vmatprep.subr.mxu0 %v3224_v5  ;;  %v1051_v60 = vpop.f32.mrf.mxu1  ;;  %v1206_v61 = vpop.f32.mrf.mxu0 }
 0x25a   :  { %v1446_v24 = vmax.f32 %v1048_v56, 0.0  ;;  %v1448_v0 = vmax.f32 %v1203_v23, 0.0  ;;  %2051 = vmatmul.mubr.f32.gmra.mxu0 %v1436_v37  ;;  %v1052_v15 = vadd.f32 %v1051_v60, %v4549_v38  ;;  %v1207_v10 = vadd.f32 %v1206_v61, %v4574_v51 }
 0x25b   :  { %2191 = vmatmul.mubr.f32.gmra.mxu1 %v1438_v57  ;;  %3140 = vmatpush3.msra.mxu0 %v1680_v54  ;;  %v1053_v11 = vpop.f32.mrf.mxu1  ;;  %v1208_v3 = vpop.f32.mrf.mxu0 }
 0x25c   :  { %v1054_v6 = vadd.f32 %v1053_v11, %v4556_v29  ;;  %v1209_v7 = vadd.f32 %v1208_v3, %v4559_v41  ;;  %3141 = vmatprep.subr.mxu0 %v3224_v5  ;;  %2055 = vmatprep.mubr.f32.mxu0 %v1446_v24  ;;  %v1454_v43 = vmax.f32 %v1052_v15, 0.0  ;;  %v1456_v22 = vmax.f32 %v1207_v10, 0.0 }
 0x25d   :  { %2195 = vmatprep.mubr.f32.mxu1 %v1448_v0  ;;  %3142 = vmatpush3.msra.mxu0 %v1679_v1  ;;  %v1057_v12 = vpop.f32.mrf.mxu1  ;;  %v1212_v13 = vpop.f32.mrf.mxu0  ;;  %v1674_v1 = vld [vmem:[%s5153_s7 + $0x430] sm:$0xff] }
 0x25e   :  { %v1455_v33 = vmax.f32 %v1054_v6, 0.0  ;;  %v1457_v14 = vmax.f32 %v1209_v7, 0.0  ;;  %2056 = vmatmul.mubr.f32.gmra.mxu0 %v1445_v4  ;;  %3143 = vmatprep.subr.mxu0 %v3224_v5  ;;  %v1058_v19 = vadd.f32 %v1057_v12, %v4549_v38  ;;  %v1213_v26 = vadd.f32 %v1212_v13, %v4574_v51 }
 0x25f   :  { %2196 = vmatmul.mubr.f32.gmra.mxu1 %v1447_v25  ;;  %v1059_v16 = vpop.f32.mrf.mxu1  ;;  %v1214_v17 = vpop.f32.mrf.mxu0  ;;  %3144 = vmatpush3.msra.mxu0 %v1678_v8 }
 0x260   :  { %v1060_v20 = vadd.f32 %v1059_v16, %v4556_v29  ;;  %v1215_v21 = vadd.f32 %v1214_v17, %v4559_v41  ;;  %2060 = vmatprep.mubr.f32.mxu0 %v1455_v33  ;;  %2200 = vmatprep.mubr.f32.mxu1 %v1457_v14  ;;  %v1463_v32 = vmax.f32 %v1058_v19, 0.0  ;;  %v1465_v63 = vmax.f32 %v1213_v26, 0.0  ;;  %v1673_v14 = vld [vmem:[%s5153_s7 + $0x428] sm:$0xff] }
 0x261   :  { %v1063_v27 = vpop.f32.mrf.mxu1  ;;  %v1218_v62 = vpop.f32.mrf.mxu0  ;;  %3145 = vmatprep.subr.mxu0 %v3224_v5 }
 0x262   :  { %v1464_v28 = vmax.f32 %v1060_v20, 0.0  ;;  %v1466_v30 = vmax.f32 %v1215_v21, 0.0  ;;  %2061 = vmatmul.mubr.f32.gmra.mxu0 %v1454_v43  ;;  %v1064_v34 = vadd.f32 %v1063_v27, %v4549_v38  ;;  %v1219_v39 = vadd.f32 %v1218_v62, %v4574_v51 }
 0x263   :  { %2201 = vmatmul.mubr.f32.gmra.mxu1 %v1456_v22  ;;  %v1065_v31 = vpop.f32.mrf.mxu1  ;;  %v1220_v9 = vpop.f32.mrf.mxu0  ;;  %3146 = vmatpush3.msra.mxu0 %v1677_v53 }
 0x264   :  { %v1066_v18 = vadd.f32 %v1065_v31, %v4556_v29  ;;  %v1221_v47 = vadd.f32 %v1220_v9, %v4559_v41  ;;  %2065 = vmatprep.mubr.f32.mxu0 %v1464_v28  ;;  %2205 = vmatprep.mubr.f32.mxu1 %v1466_v30  ;;  %v1472_v48 = vmax.f32 %v1064_v34, 0.0  ;;  %v1474_v36 = vmax.f32 %v1219_v39, 0.0  ;;  %v1672_v30 = vld [vmem:[%s5153_s7 + $0x420] sm:$0xff] }
 0x265   :  { %v1069_v40 = vpop.f32.mrf.mxu1  ;;  %v1224_v42 = vpop.f32.mrf.mxu0  ;;  %3147 = vmatprep.subr.mxu0 %v3224_v5 }
 0x266   :  { %v1473_v44 = vmax.f32 %v1066_v18, 0.0  ;;  %v1475_v45 = vmax.f32 %v1221_v47, 0.0  ;;  %2066 = vmatmul.mubr.f32.gmra.mxu0 %v1463_v32  ;;  %v1070_v49 = vadd.f32 %v1069_v40, %v4549_v38  ;;  %v1225_v37 = vadd.f32 %v1224_v42, %v4574_v51 }
 0x267   :  { %2206 = vmatmul.mubr.f32.gmra.mxu1 %v1465_v63  ;;  %v1071_v46 = vpop.f32.mrf.mxu1  ;;  %v1226_v2 = vpop.f32.mrf.mxu0  ;;  %3148 = vmatpush3.msra.mxu0 %v1676_v59 }
 0x268   :  { %v1072_v50 = vadd.f32 %v1071_v46, %v4556_v29  ;;  %v1227_v52 = vadd.f32 %v1226_v2, %v4559_v41  ;;  %2070 = vmatprep.mubr.f32.mxu0 %v1473_v44  ;;  %2210 = vmatprep.mubr.f32.mxu1 %v1475_v45  ;;  %v1481_v60 = vmax.f32 %v1070_v49, 0.0  ;;  %v1483_v11 = vmax.f32 %v1225_v37, 0.0  ;;  %v1671_v45 = vld [vmem:[%s5153_s7 + $0x418] sm:$0xff] }
 0x269   :  { %v1075_v55 = vpop.f32.mrf.mxu1  ;;  %v1230_v56 = vpop.f32.mrf.mxu0  ;;  %3149 = vmatprep.subr.mxu0 %v3224_v5 }
 0x26a   :  { %v1482_v23 = vmax.f32 %v1072_v50, 0.0  ;;  %v1484_v54 = vmax.f32 %v1227_v52, 0.0  ;;  %2071 = vmatmul.mubr.f32.gmra.mxu0 %v1472_v48  ;;  %v1076_v61 = vadd.f32 %v1075_v55, %v4549_v38  ;;  %v1231_v3 = vadd.f32 %v1230_v56, %v4574_v51 }
 0x26b   :  { %2211 = vmatmul.mubr.f32.gmra.mxu1 %v1474_v36  ;;  %v1077_v57 = vpop.f32.mrf.mxu1  ;;  %v1232_v58 = vpop.f32.mrf.mxu0  ;;  %3150 = vmatpush3.msra.mxu0 %v1675_v35 }
 0x26c   :  { %v1078_v24 = vadd.f32 %v1077_v57, %v4556_v29  ;;  %v1233_v0 = vadd.f32 %v1232_v58, %v4559_v41  ;;  %2075 = vmatprep.mubr.f32.mxu0 %v1482_v23  ;;  %2215 = vmatprep.mubr.f32.mxu1 %v1484_v54  ;;  %v1490_v10 = vmax.f32 %v1076_v61, 0.0  ;;  %v1492_v16 = vmax.f32 %v1231_v3, 0.0  ;;  %v1670_v54 = vld [vmem:[%s5153_s7 + $0x410] sm:$0xff] }
 0x26d   :  { %v1081_v4 = vpop.f32.mrf.mxu1  ;;  %v1236_v15 = vpop.f32.mrf.mxu0  ;;  %3151 = vmatprep.subr.mxu0 %v3224_v5 }
 0x26e   :  { %v1491_v6 = vmax.f32 %v1078_v24, 0.0  ;;  %v1493_v7 = vmax.f32 %v1233_v0, 0.0  ;;  %2076 = vmatmul.mubr.f32.gmra.mxu0 %v1481_v60  ;;  %v1082_v12 = vadd.f32 %v1081_v4, %v4549_v38  ;;  %v1237_v17 = vadd.f32 %v1236_v15, %v4574_v51 }
 0x26f   :  { %2216 = vmatmul.mubr.f32.gmra.mxu1 %v1483_v11  ;;  %v1083_v8 = vpop.f32.mrf.mxu1  ;;  %v1238_v25 = vpop.f32.mrf.mxu0  ;;  %3152 = vmatpush3.msra.mxu0 %v1674_v1 }
 0x270   :  { %v1084_v13 = vadd.f32 %v1083_v8, %v4556_v29  ;;  %v1239_v33 = vadd.f32 %v1238_v25, %v4559_v41  ;;  %2080 = vmatprep.mubr.f32.mxu0 %v1491_v6  ;;  %2220 = vmatprep.mubr.f32.mxu1 %v1493_v7  ;;  %v1499_v26 = vmax.f32 %v1082_v12, 0.0  ;;  %v1501_v31 = vmax.f32 %v1237_v17, 0.0  ;;  %v1669_v7 = vld [vmem:[%s5153_s7 + $0x408] sm:$0xff] }
 0x271   :  { %v1087_v43 = vpop.f32.mrf.mxu1  ;;  %v1242_v19 = vpop.f32.mrf.mxu0  ;;  %3153 = vmatprep.subr.mxu0 %v3224_v5 }
 0x272   :  { %v1500_v20 = vmax.f32 %v1084_v13, 0.0  ;;  %v1502_v21 = vmax.f32 %v1239_v33, 0.0  ;;  %2081 = vmatmul.mubr.f32.gmra.mxu0 %v1490_v10  ;;  %v1088_v27 = vadd.f32 %v1087_v43, %v4549_v38  ;;  %v1243_v9 = vadd.f32 %v1242_v19, %v4574_v51  ;;  %v4716_v10 = vld [vmem:[%s5154_s6 + $0x8] ss:$0 sm:$0xff] }
 0x273   :  { %2221 = vmatmul.mubr.f32.gmra.mxu1 %v1492_v16  ;;  %v1089_v53 = vpop.f32.mrf.mxu1  ;;  %v1244_v22 = vpop.f32.mrf.mxu0  ;;  %3154 = vmatpush3.msra.mxu0 %v1673_v14 }
 0x274   :  { %v1090_v62 = vadd.f32 %v1089_v53, %v4556_v29  ;;  %v1245_v28 = vadd.f32 %v1244_v22, %v4559_v41  ;;  %2085 = vmatprep.mubr.f32.mxu0 %v1500_v20  ;;  %2225 = vmatprep.mubr.f32.mxu1 %v1502_v21  ;;  %v1508_v39 = vmax.f32 %v1088_v27, 0.0  ;;  %v1510_v46 = vmax.f32 %v1243_v9, 0.0 }
 0x275   :  { %v1093_v32 = vpop.f32.mrf.mxu1  ;;  %v1248_v34 = vpop.f32.mrf.mxu0  ;;  %3155 = vmatprep.subr.mxu0 %v3224_v5 }
 0x276   :  { %v1509_v18 = vmax.f32 %v1090_v62, 0.0  ;;  %v1511_v47 = vmax.f32 %v1245_v28, 0.0  ;;  %2086 = vmatmul.mubr.f32.gmra.mxu0 %v1499_v26  ;;  %v1094_v40 = vadd.f32 %v1093_v32, %v4549_v38  ;;  %v1249_v2 = vadd.f32 %v1248_v34, %v4574_v51 }
 0x277   :  { %2226 = vmatmul.mubr.f32.gmra.mxu1 %v1501_v31  ;;  %v1095_v59 = vpop.f32.mrf.mxu1  ;;  %v1250_v63 = vpop.f32.mrf.mxu0  ;;  %3156 = vmatpush3.msra.mxu0 %v1672_v30 }
 0x278   :  { %v1096_v42 = vadd.f32 %v1095_v59, %v4556_v29  ;;  %v1251_v44 = vadd.f32 %v1250_v63, %v4559_v41  ;;  %2090 = vmatprep.mubr.f32.mxu0 %v1509_v18  ;;  %2230 = vmatprep.mubr.f32.mxu1 %v1511_v47  ;;  %v1517_v37 = vmax.f32 %v1094_v40, 0.0  ;;  %v1519_v57 = vmax.f32 %v1249_v2, 0.0 }
 0x279   :  { %v1099_v48 = vpop.f32.mrf.mxu1  ;;  %v1254_v49 = vpop.f32.mrf.mxu0  ;;  %3157 = vmatprep.subr.mxu0 %v3224_v5 }
 0x27a   :  { %v1518_v50 = vmax.f32 %v1096_v42, 0.0  ;;  %v1520_v52 = vmax.f32 %v1251_v44, 0.0  ;;  %2091 = vmatmul.mubr.f32.gmra.mxu0 %v1508_v39  ;;  %v1100_v55 = vadd.f32 %v1099_v48, %v4549_v38  ;;  %v1255_v58 = vadd.f32 %v1254_v49, %v4574_v51 }
 0x27b   :  { %2231 = vmatmul.mubr.f32.gmra.mxu1 %v1510_v46  ;;  %3158 = vmatpush3.msra.mxu0 %v1671_v45  ;;  %v1101_v35 = vpop.f32.mrf.mxu1  ;;  %v1256_v36 = vpop.f32.mrf.mxu0 }
 0x27c   :  { %v1102_v56 = vadd.f32 %v1101_v35, %v4556_v29  ;;  %v1257_v23 = vadd.f32 %v1256_v36, %v4559_v41  ;;  %2095 = vmatprep.mubr.f32.mxu0 %v1518_v50  ;;  %2235 = vmatprep.mubr.f32.mxu1 %v1520_v52  ;;  %v1526_v3 = vmax.f32 %v1100_v55, 0.0  ;;  %v1528_v8 = vmax.f32 %v1255_v58, 0.0 }
 0x27d   :  { %v1105_v60 = vpop.f32.mrf.mxu1  ;;  %v1260_v61 = vpop.f32.mrf.mxu0  ;;  %3159 = vmatprep.subr.mxu0 %v3224_v5 }
 0x27e   :  { %v1527_v24 = vmax.f32 %v1102_v56, 0.0  ;;  %v1529_v0 = vmax.f32 %v1257_v23, 0.0  ;;  %2096 = vmatmul.mubr.f32.gmra.mxu0 %v1517_v37  ;;  %v1106_v4 = vadd.f32 %v1105_v60, %v4549_v38  ;;  %v1261_v25 = vadd.f32 %v1260_v61, %v4574_v51  ;;  %v1668_v51 = vld [vmem:[%s5153_s7 + $0x400] sm:$0xff] }
 0x27f   :  { %2236 = vmatmul.mubr.f32.gmra.mxu1 %v1519_v57  ;;  %3160 = vmatpush3.msra.mxu0 %v1670_v54  ;;  %v1107_v1 = vpop.f32.mrf.mxu1  ;;  %v1262_v11 = vpop.f32.mrf.mxu0 }
 0x280   :  { %v1108_v15 = vadd.f32 %v1107_v1, %v4556_v29  ;;  %v1263_v6 = vadd.f32 %v1262_v11, %v4559_v41  ;;  %2100 = vmatprep.mubr.f32.mxu0 %v1527_v24  ;;  %2240 = vmatprep.mubr.f32.mxu1 %v1529_v0  ;;  %v1535_v13 = vmax.f32 %v1106_v4, 0.0  ;;  %v1537_v14 = vmax.f32 %v1261_v25, 0.0 }
 0x281   :  { %v1331_v12 = vpop.f32.mrf.mxu1  ;;  %3161 = vmatprep.subr.mxu0 %v3224_v5 }
 0x282   :  { %v1536_v38 = vmax.f32 %v1108_v15, 0.0  ;;  %v1538_v29 = vmax.f32 %v1263_v6, 0.0  ;;  %2101 = vmatmul.mubr.f32.gmra.mxu0 %v1526_v3  ;;  %v1332_v33 = vadd.f32 %v4716_v10, %v1331_v12 }
 0x283   :  { %2241 = vmatmul.mubr.f32.gmra.mxu1 %v1528_v8  ;;  %3162 = vmatpush3.msra.mxu0 %v1669_v7  ;;  %v3090_v41 = vpop.f32.mrf.mxu1 }
 0x284   :  { %2105 = vmatprep.mubr.f32.mxu0 %v1536_v38  ;;  %2245 = vmatprep.mubr.f32.mxu1 %v1538_v29  ;;  %v1413_v43 = vmax.f32 %v1332_v33, 0.0 }
 0x285   :  { %v1336_v16 = vpop.f32.mrf.mxu1  ;;  %3163 = vmatprep.subr.mxu0 %v3224_v5 }
 0x286   :  { %2106 = vmatmul.mubr.f32.gmra.mxu0 %v1535_v13  ;;  %v1337_v19 = vadd.f32 %v4716_v10, %v1336_v16 }
 0x287   :  { %2246 = vmatmul.mubr.f32.gmra.mxu1 %v1537_v14  ;;  %3164 = vmatpush3.msra.mxu0 %v1668_v51  ;;  %v3093_v17 = vpop.f32.mrf.mxu1 }
 0x288   :  { %3165 = vmatprep.mubr.msk.f32.mxu0 %vm3225_vm0, %v3224_v5  ;;  %v1422_v53 = vmax.f32 %v1337_v19, 0.0 }
 0x289   :  { %v1341_v20 = vpop.f32.mrf.mxu1 }
 0x28a   :  { %3166 = vmatmul.mubr.f32.vlgmr.msra.gmra.mxu0 %v1413_v43  ;;  %v1342_v22 = vadd.f32 %v4716_v10, %v1341_v20 }
 0x28b   :  { %v3096_v21 = vpop.f32.mrf.mxu1  ;;  %3168 = vmatprep.mubr.msk.f32.mxu0 %vm3225_vm0, %v3224_v5 }
 0x28c   :  { %v1431_v62 = vmax.f32 %v1342_v22, 0.0 }
 0x28d   :  { %v1346_v26 = vpop.f32.mrf.mxu1 }
 0x28e   :  { %3169 = vmatmul.mubr.f32.gmra.mxu0 %v1422_v53  ;;  %v1347_v28 = vadd.f32 %v4716_v10, %v1346_v26 }
 0x28f   :  { %v3099_v27 = vpop.f32.mrf.mxu1  ;;  %3171 = vmatprep.mubr.msk.f32.mxu0 %vm3225_vm0, %v3224_v5 }
 0x290   :  { %v1440_v9 = vmax.f32 %v1347_v28, 0.0 }
 0x291   :  { %v1351_v30 = vpop.f32.mrf.mxu1 }
 0x292   :  { %3172 = vmatmul.mubr.f32.gmra.mxu0 %v1431_v62  ;;  %v1352_v32 = vadd.f32 %v4716_v10, %v1351_v30 }
 0x293   :  { %v3102_v31 = vpop.f32.mrf.mxu1  ;;  %3174 = vmatprep.mubr.msk.f32.mxu0 %vm3225_vm0, %v3224_v5 }
 0x294   :  { %v1449_v47 = vmax.f32 %v1352_v32, 0.0 }
 0x295   :  { %v1356_v34 = vpop.f32.mrf.mxu1 }
 0x296   :  { %3175 = vmatmul.mubr.f32.gmra.mxu0 %v1440_v9  ;;  %v1357_v59 = vadd.f32 %v4716_v10, %v1356_v34 }
 0x297   :  { %v3105_v18 = vpop.f32.mrf.mxu1  ;;  %3177 = vmatprep.mubr.msk.f32.mxu0 %vm3225_vm0, %v3224_v5 }
 0x298   :  { %v1458_v40 = vmax.f32 %v1357_v59, 0.0 }
 0x299   :  { %v1361_v63 = vpop.f32.mrf.mxu1 }
 0x29a   :  { %3178 = vmatmul.mubr.f32.gmra.mxu0 %v1449_v47  ;;  %v1362_v42 = vadd.f32 %v4716_v10, %v1361_v63 }
 0x29b   :  { %v3108_v39 = vpop.f32.mrf.mxu1  ;;  %3180 = vmatprep.mubr.msk.f32.mxu0 %vm3225_vm0, %v3224_v5 }
 0x29c   :  { %v1467_v46 = vmax.f32 %v1362_v42, 0.0 }
 0x29d   :  { %v1366_v44 = vpop.f32.mrf.mxu1 }
 0x29e   :  { %3181 = vmatmul.mubr.f32.gmra.mxu0 %v1458_v40  ;;  %v1367_v2 = vadd.f32 %v4716_v10, %v1366_v44 }
 0x29f   :  { %v3111_v45 = vpop.f32.mrf.mxu1  ;;  %3183 = vmatprep.mubr.msk.f32.mxu0 %vm3225_vm0, %v3224_v5 }
 0x2a0   :  { %v1476_v50 = vmax.f32 %v1367_v2, 0.0 }
 0x2a1   :  { %v1371_v48 = vpop.f32.mrf.mxu1 }
 0x2a2   :  { %3184 = vmatmul.mubr.f32.gmra.mxu0 %v1467_v46  ;;  %v1372_v52 = vadd.f32 %v4716_v10, %v1371_v48 }
 0x2a3   :  { %v3114_v49 = vpop.f32.mrf.mxu1  ;;  %3186 = vmatprep.mubr.msk.f32.mxu0 %vm3225_vm0, %v3224_v5 }
 0x2a4   :  { %v1485_v37 = vmax.f32 %v1372_v52, 0.0 }
 0x2a5   :  { %v1376_v35 = vpop.f32.mrf.mxu1 }
 0x2a6   :  { %3187 = vmatmul.mubr.f32.gmra.mxu0 %v1476_v50  ;;  %v1377_v55 = vadd.f32 %v4716_v10, %v1376_v35 }
 0x2a7   :  { %v3117_v36 = vpop.f32.mrf.mxu1  ;;  %3189 = vmatprep.mubr.msk.f32.mxu0 %vm3225_vm0, %v3224_v5 }
 0x2a8   :  { %v1494_v54 = vmax.f32 %v1377_v55, 0.0 }
 0x2a9   :  { %v1381_v56 = vpop.f32.mrf.mxu1 }
 0x2aa   :  { %3190 = vmatmul.mubr.f32.gmra.mxu0 %v1485_v37  ;;  %v1382_v57 = vadd.f32 %v4716_v10, %v1381_v56 }
 0x2ab   :  { %v3120_v23 = vpop.f32.mrf.mxu1  ;;  %3192 = vmatprep.mubr.msk.f32.mxu0 %vm3225_vm0, %v3224_v5 }
 0x2ac   :  { %v1503_v61 = vmax.f32 %v1382_v57, 0.0 }
 0x2ad   :  { %v1386_v58 = vpop.f32.mrf.mxu1 }
 0x2ae   :  { %3193 = vmatmul.mubr.f32.gmra.mxu0 %v1494_v54  ;;  %v1387_v24 = vadd.f32 %v4716_v10, %v1386_v58 }
 0x2af   :  { %v3123_v60 = vpop.f32.mrf.mxu1  ;;  %3195 = vmatprep.mubr.msk.f32.mxu0 %vm3225_vm0, %v3224_v5 }
 0x2b0   :  { %v1512_v11 = vmax.f32 %v1387_v24, 0.0 }
 0x2b1   :  { %v1391_v0 = vpop.f32.mrf.mxu1 }
 0x2b2   :  { %3196 = vmatmul.mubr.f32.gmra.mxu0 %v1503_v61  ;;  %v1392_v3 = vadd.f32 %v4716_v10, %v1391_v0 }
 0x2b3   :  { %v3126_v1 = vpop.f32.mrf.mxu1  ;;  %3198 = vmatprep.mubr.msk.f32.mxu0 %vm3225_vm0, %v3224_v5 }
 0x2b4   :  { %v1521_v6 = vmax.f32 %v1392_v3, 0.0 }
 0x2b5   :  { %v1396_v4 = vpop.f32.mrf.mxu1 }
 0x2b6   :  { %3199 = vmatmul.mubr.f32.gmra.mxu0 %v1512_v11  ;;  %v1397_v7 = vadd.f32 %v4716_v10, %v1396_v4 }
 0x2b7   :  { %v3129_v15 = vpop.f32.mrf.mxu1  ;;  %3201 = vmatprep.mubr.msk.f32.mxu0 %vm3225_vm0, %v3224_v5 }
 0x2b8   :  { %v1530_v12 = vmax.f32 %v1397_v7, 0.0 }
 0x2b9   :  { %v1401_v8 = vpop.f32.mrf.mxu1 }
 0x2ba   :  { %3202 = vmatmul.mubr.f32.gmra.mxu0 %v1521_v6  ;;  %v1402_v38 = vadd.f32 %v4716_v10, %v1401_v8 }
 0x2bb   :  { %v3132_v25 = vpop.f32.mrf.mxu1  ;;  %3204 = vmatprep.mubr.msk.f32.mxu0 %vm3225_vm0, %v3224_v5 }
 0x2bc   :  { %v1539_v29 = vmax.f32 %v1402_v38, 0.0 }
 0x2be   :  { %3205 = vmatmul.mubr.f32.gmra.mxu0 %v1530_v12 }
 0x2bf   :  { %3207 = vmatprep.mubr.msk.f32.mxu0 %vm3225_vm0, %v3224_v5 }
 0x2c2   :  { %3208 = vmatmul.mubr.f32.gmra.mxu0 %v1539_v29 }
 0x2d1   :  { %v2702_v41 = vpop.f32.mrf.mxu0  ;;  %v4768_v13 = vpop.f32.mrf.mxu1 }
 0x2d3   :  { %v2703_v33 = vpop.f32.mrf.mxu0  ;;  %v4770_v51 = vpop.f32.mrf.mxu1 }
 0x2d4   :  { %v4772_v14 = vadd.f32 %v2703_v33, %v2702_v41 }
 0x2d5   :  { %v2705_v16 = vpop.f32.mrf.mxu0  ;;  %v4774_v17 = vpop.f32.mrf.mxu1 }
 0x2d7   :  { %v2706_v43 = vpop.f32.mrf.mxu0  ;;  %v4776_v19 = vpop.f32.mrf.mxu1 }
 0x2d8   :  { %v4778_v10 = vadd.f32 %v2706_v43, %v2705_v16 }
 0x2d9   :  { %v2708_v20 = vpop.f32.mrf.mxu0  ;;  %v4780_v5 = vpop.f32.mrf.mxu1 }
 0x2db   :  { %v2709_v21 = vpop.f32.mrf.mxu0  ;;  %v4782_v53 = vpop.f32.mrf.mxu1 }
 0x2dc   :  { %v4784_v22 = vadd.f32 %v2709_v21, %v2708_v20 }
 0x2dd   :  { %v2711_v26 = vpop.f32.mrf.mxu0  ;;  %v4786_v27 = vpop.f32.mrf.mxu1 }
 0x2df   :  { %v2712_v62 = vpop.f32.mrf.mxu0  ;;  %v4788_v28 = vpop.f32.mrf.mxu1 }
 0x2e0   :  { %v4790_v30 = vadd.f32 %v2712_v62, %v2711_v26 }
 0x2e1   :  { %v4792_v31 = vpop.f32.mrf.mxu1 }
 0x2e2   :  { %v2714_v9 = vpop.f32.mrf.mxu0 }
 0x2e3   :  { %v4794_v32 = vpop.f32.mrf.mxu1 }
 0x2e4   :  { %v2715_v34 = vpop.f32.mrf.mxu0 }
 0x2e5   :  { %v4796_v18 = vadd.f32 %v2715_v34, %v2714_v9  ;;  %v4798_v47 = vpop.f32.mrf.mxu1  ;;  %v16_v34 = vstv %s5155_s10 }
 0x2e6   :  { %v2717_v59 = vpop.f32.mrf.mxu0  ;;  %17 = vst [vmem:[#allocation2] sm:$0x1] %v16_v34 }
 0x2e7   :  { %v4800_v63 = vpop.f32.mrf.mxu1 }
 0x2e8   :  { %v2718_v39 = vpop.f32.mrf.mxu0 }
 0x2e9   :  { %v4802_v40 = vadd.f32 %v2718_v39, %v2717_v59  ;;  %v4804_v42 = vpop.f32.mrf.mxu1 }
 0x2ea   :  { %v2720_v44 = vpop.f32.mrf.mxu0 }
 0x2eb   :  { %v4806_v45 = vpop.f32.mrf.mxu1 }
 0x2ec   :  { %v2721_v46 = vpop.f32.mrf.mxu0 }
 0x2ed   :  { %v4808_v2 = vadd.f32 %v2721_v46, %v2720_v44  ;;  %v4810_v48 = vpop.f32.mrf.mxu1 }
 0x2ee   :  { %v2723_v49 = vpop.f32.mrf.mxu0 }
 0x2ef   :  { %v4812_v50 = vpop.f32.mrf.mxu1 }
 0x2f0   :  { %v2724_v52 = vpop.f32.mrf.mxu0 }
 0x2f1   :  { %v4814_v35 = vadd.f32 %v2724_v52, %v2723_v49  ;;  %v4816_v36 = vpop.f32.mrf.mxu1 }
 0x2f2   :  { %5159 = vst [vmem:[#allocation3_spill] sm:$0xff] %v4816_v36  ;;  %v2726_v37 = vpop.f32.mrf.mxu0 }
 0x2f3   :  { %v4818_v55 = vpop.f32.mrf.mxu1 }
 0x2f4   :  { %5160 = vst [vmem:[#allocation4_spill] sm:$0xff] %v4818_v55  ;;  %v2727_v56 = vpop.f32.mrf.mxu0 }
 0x2f5   :  { %v4820_v23 = vadd.f32 %v2727_v56, %v2726_v37  ;;  %v4822_v54 = vpop.f32.mrf.mxu1 }
 0x2f6   :  { %5162 = vst [vmem:[#allocation6_spill] sm:$0xff] %v4822_v54  ;;  %v2729_v57 = vpop.f32.mrf.mxu0 }
 0x2f7   :  { %5161 = vst [vmem:[#allocation5_spill] sm:$0xff] %v4820_v23  ;;  %v4824_v58 = vpop.f32.mrf.mxu1 }
 0x2f8   :  { %5163 = vst [vmem:[#allocation7_spill] sm:$0xff] %v4824_v58  ;;  %v2730_v60 = vpop.f32.mrf.mxu0 }
 0x2f9   :  { %v4826_v61 = vadd.f32 %v2730_v60, %v2729_v57  ;;  %v4828_v24 = vpop.f32.mrf.mxu1 }
 0x2fa   :  { %5165 = vst [vmem:[#allocation9_spill] sm:$0xff] %v4828_v24  ;;  %v2732_v0 = vpop.f32.mrf.mxu0 }
 0x2fb   :  { %5164 = vst [vmem:[#allocation8_spill] sm:$0xff] %v4826_v61  ;;  %v4830_v1 = vpop.f32.mrf.mxu1  ;;  %v4914_v61 = vld [vmem:[%s5156_s8] ss:$0 sm:$0xff] }
 0x2fc   :  { %5166 = vst [vmem:[#allocation10_spill] sm:$0xff] %v4830_v1  ;;  %v2733_v11 = vpop.f32.mrf.mxu0 }
 0x2fd   :  { %v4832_v3 = vadd.f32 %v2733_v11, %v2732_v0  ;;  %v4834_v4 = vpop.f32.mrf.mxu1 }
 0x2fe   :  { %5168 = vst [vmem:[#allocation12_spill] sm:$0xff] %v4834_v4  ;;  %v2735_v15 = vpop.f32.mrf.mxu0 }
 0x2ff   :  { %5167 = vst [vmem:[#allocation11_spill] sm:$0xff] %v4832_v3  ;;  %v4836_v6 = vpop.f32.mrf.mxu1 }
 0x300   :  { %5169 = vst [vmem:[#allocation13_spill] sm:$0xff] %v4836_v6  ;;  %v2736_v7 = vpop.f32.mrf.mxu0 }
 0x301   :  { %v4838_v8 = vadd.f32 %v2736_v7, %v2735_v15  ;;  %v4840_v25 = vpop.f32.mrf.mxu1 }
 0x302   :  { %5171 = vst [vmem:[#allocation15_spill] sm:$0xff] %v4840_v25  ;;  %v2738_v12 = vpop.f32.mrf.mxu0 }
 0x303   :  { %5170 = vst [vmem:[#allocation14_spill] sm:$0xff] %v4838_v8  ;;  %v4842_v38 = vpop.f32.mrf.mxu1 }
 0x304   :  { %5172 = vst [vmem:[#allocation16_spill] sm:$0xff] %v4842_v38  ;;  %v2739_v29 = vpop.f32.mrf.mxu0 }
 0x305   :  { %v4844_v41 = vadd.f32 %v2739_v29, %v2738_v12  ;;  %v4846_v33 = vpop.f32.mrf.mxu1 }
 0x306   :  { %5174 = vst [vmem:[#allocation18_spill] sm:$0xff] %v4846_v33  ;;  %v2741_v16 = vpop.f32.mrf.mxu0 }
 0x307   :  { %5173 = vst [vmem:[#allocation17_spill] sm:$0xff] %v4844_v41  ;;  %v4848_v43 = vpop.f32.mrf.mxu1 }
 0x308   :  { %5175 = vst [vmem:[#allocation19_spill] sm:$0xff] %v4848_v43  ;;  %v2742_v20 = vpop.f32.mrf.mxu0 }
 0x309   :  { %v4850_v21 = vadd.f32 %v2742_v20, %v2741_v16  ;;  %v4852_v26 = vpop.f32.mrf.mxu1 }
 0x30a   :  { %5177 = vst [vmem:[#allocation21_spill] sm:$0xff] %v4852_v26  ;;  %v2744_v62 = vpop.f32.mrf.mxu0 }
 0x30b   :  { %5176 = vst [vmem:[#allocation20_spill] sm:$0xff] %v4850_v21  ;;  %v4854_v9 = vpop.f32.mrf.mxu1 }
 0x30c   :  { %5178 = vst [vmem:[#allocation22_spill] sm:$0xff] %v4854_v9  ;;  %v2745_v59 = vpop.f32.mrf.mxu0 }
 0x30d   :  { %v4859_v39 = vadd.f32 %v2745_v59, %v2744_v62 }
 0x30e   :  { %v2856_v44 = vpop.f32.mrf.mxu0 }
 0x30f   :  { %5179 = vst [vmem:[#allocation23_spill] sm:$0xff] %v4859_v39  ;;  %v2933_v46 = vpop.f32.mrf.mxu1 }
 0x310   :  { %v2857_v49 = vpop.f32.mrf.mxu0 }
 0x311   :  { %v2934_v52 = vpop.f32.mrf.mxu1 }
 0x312   :  { %v2859_v37 = vpop.f32.mrf.mxu0 }
 0x313   :  { %v4861_v56 = vpop.f32.mrf.mxu1 }
 0x314   :  { %v2860_v57 = vpop.f32.mrf.mxu0 }
 0x315   :  { %v2937_v60 = vpop.f32.mrf.mxu1 }
 0x316   :  { %v2862_v0 = vpop.f32.mrf.mxu0 }
 0x317   :  { %v4863_v11 = vpop.f32.mrf.mxu1 }
 0x318   :  { %v2863_v15 = vpop.f32.mrf.mxu0 }
 0x319   :  { %v4865_v12 = vpop.f32.mrf.mxu1 }
 0x31a   :  { %v2865_v7 = vpop.f32.mrf.mxu0 }
 0x31b   :  { %v4869_v20 = vpop.f32.mrf.mxu1 }
 0x31c   :  { %v2866_v29 = vpop.f32.mrf.mxu0 }
 0x31d   :  { %v4875_v59 = vpop.f32.mrf.mxu1 }
 0x31e   :  { %v4867_v16 = vpop.f32.mrf.mxu0 }
 0x31f   :  { %v4881_v39 = vpop.f32.mrf.mxu1 }
 0x320   :  { %v4871_v62 = vpop.f32.mrf.mxu0 }
 0x321   :  { %v4887_v21 = vpop.f32.mrf.mxu1 }
 0x322   :  { %v4873_v34 = vpop.f32.mrf.mxu0 }
 0x323   :  { %v4893_v41 = vpop.f32.mrf.mxu1 }
 0x324   :  { %v4877_v9 = vpop.f32.mrf.mxu0 }
 0x325   :  { %v4899_v8 = vpop.f32.mrf.mxu1 }
 0x326   :  { %v4879_v26 = vpop.f32.mrf.mxu0 }
 0x327   :  { %v4905_v3 = vpop.f32.mrf.mxu1 }
 0x328   :  { %v4883_v43 = vpop.f32.mrf.mxu0  ;;  %5186 = vst [vmem:[#allocation30_spill] sm:$0xff] %v4905_v3  ;;  %v2861_v3 = vadd.f32 %v2860_v57, %v2859_v37  ;;  %v2793_v57 = vadd.f32 %v4794_v32, %v4792_v31  ;;  %v1783_v31 = vadd.f32 %v4802_v40, %v4914_v61  ;;  %v1788_v40 = vadd.f32 %v4808_v2, %v4914_v61 }
 0x32a   :  { %v4885_v33 = vpop.f32.mrf.mxu0 }
 0x32c   :  { %v4889_v38 = vpop.f32.mrf.mxu0 }
 0x32d   :  { %5180 = vst [vmem:[#allocation24_spill] sm:$0xff] %v4889_v38 }
 0x32e   :  { %v4891_v25 = vpop.f32.mrf.mxu0 }
 0x32f   :  { %5181 = vst [vmem:[#allocation25_spill] sm:$0xff] %v4891_v25 }
 0x330   :  { %v4895_v6 = vpop.f32.mrf.mxu0 }
 0x331   :  { %5182 = vst [vmem:[#allocation26_spill] sm:$0xff] %v4895_v6  ;;  %v4916_v6 = vpop.f32.mrf.mxu1 }
 0x332   :  { %v4897_v4 = vpop.f32.mrf.mxu0  ;;  %5189 = vst [vmem:[#allocation33_spill] sm:$0xff] %v4916_v6  ;;  %v1763_v6 = vadd.f32 %v4778_v10, %v4914_v61  ;;  %v2787_v10 = vadd.f32 %v4782_v53, %v4780_v5  ;;  %v4960_v5 = vld [vmem:[%s5157_s9] ss:$0 sm:$0xff] }
 0x333   :  { %5183 = vst [vmem:[#allocation27_spill] sm:$0xff] %v4897_v4 }
 0x334   :  { %v4901_v1 = vpop.f32.mrf.mxu0 }
 0x335   :  { %5184 = vst [vmem:[#allocation28_spill] sm:$0xff] %v4901_v1  ;;  %v4924_v1 = vpop.f32.mrf.mxu1 }
 0x336   :  { %v4903_v24 = vpop.f32.mrf.mxu0  ;;  %5192 = vst [vmem:[#allocation36_spill] sm:$0xff] %v4924_v1 }
 0x337   :  { %5185 = vst [vmem:[#allocation29_spill] sm:$0xff] %v4903_v24  ;;  %v1758_v24 = vadd.f32 %v4772_v14, %v4914_v61  ;;  %v2784_v14 = vadd.f32 %v4776_v19, %v4774_v17  ;;  %v1773_v17 = vadd.f32 %v4790_v30, %v4914_v61 }
 0x338   :  { %v4907_v58 = vpop.f32.mrf.mxu0 }
 0x339   :  { %5187 = vst [vmem:[#allocation31_spill] sm:$0xff] %v4907_v58  ;;  %v2858_v58 = vadd.f32 %v2857_v49, %v2856_v44  ;;  %v1903_v38 = vadd.f32 %v2784_v14, %v1763_v6  ;;  %v2864_v49 = vadd.f32 %v2863_v15, %v2862_v0 }
 0x33a   :  { %v4909_v54 = vpop.f32.mrf.mxu0 }
 0x33b   :  { %5188 = vst [vmem:[#allocation32_spill] sm:$0xff] %v4909_v54  ;;  %v2781_v54 = vadd.f32 %v4770_v51, %v4768_v13  ;;  %v1768_v13 = vadd.f32 %v4784_v22, %v4914_v61  ;;  %v2935_v51 = vadd.f32 %v2934_v52, %v2933_v46  ;;  %v2043_v44 = vadd.f32 %v2861_v3, %v1903_v38 }
 0x33c   :  { %v4918_v4 = vpop.f32.mrf.mxu0  ;;  %v2790_v22 = vadd.f32 %v4788_v28, %v4786_v27  ;;  %v2867_v46 = vadd.f32 %v2866_v29, %v2865_v7  ;;  %v2941_v27 = vadd.f32 %v4865_v12, %v4863_v11  ;;  %v2870_v7 = vadd.f32 %v4871_v62, %v4867_v16 }
 0x33d   :  { %5190 = vst [vmem:[#allocation34_spill] sm:$0xff] %v4918_v4  ;;  %v1898_v23 = vadd.f32 %v2781_v54, %v1758_v24  ;;  %v4934_v4 = vpop.f32.mrf.mxu1  ;;  %v2944_v11 = vadd.f32 %v4875_v59, %v4869_v20  ;;  %v2873_v20 = vadd.f32 %v4877_v9, %v4873_v34  ;;  %v2876_v9 = vadd.f32 %v4883_v43, %v4879_v26 }
 0x33e   :  { %v4920_v25 = vpop.f32.mrf.mxu0  ;;  %v1913_v3 = vadd.f32 %v2790_v22, %v1773_v17  ;;  %v2802_v26 = vadd.f32 %v4812_v50, %v4810_v48 }
 0x33f   :  { %5191 = vst [vmem:[#allocation35_spill] sm:$0xff] %v4920_v25  ;;  %v2038_v1 = vadd.f32 %v2858_v58, %v1898_v23  ;;  %v4944_v54 = vpop.f32.mrf.mxu1  ;;  %v1908_v23 = vadd.f32 %v2787_v10, %v1768_v13  ;;  %v2938_v58 = vadd.f32 %v2937_v60, %v4861_v56  ;;  %v2796_v10 = vadd.f32 %v4800_v63, %v4798_v47 }
 0x340   :  { %v4926_v55 = vpop.f32.mrf.mxu0  ;;  %v2053_v60 = vadd.f32 %v2867_v46, %v1913_v3  ;;  %v2947_v47 = vadd.f32 %v4887_v21, %v4881_v39  ;;  %v1793_v21 = vadd.f32 %v4814_v35, %v4914_v61 }
 0x341   :  { %5193 = vst [vmem:[#allocation37_spill] sm:$0xff] %v4926_v55  ;;  %v4955_v52 = vpop.f32.mrf.mxu1  ;;  %v2048_v53 = vadd.f32 %v2864_v49, %v1908_v23  ;;  %v2183_v30 = vadd.f32 %v2938_v58, %v2043_v44  ;;  %v1923_v23 = vadd.f32 %v2796_v10, %v1783_v31 }
 0x342   :  { %v4930_v36 = vpop.f32.mrf.mxu0  ;;  %v2193_v44 = vadd.f32 %v2944_v11, %v2053_v60  ;;  %v5197_v60 = vld [vmem:[#allocation33_spill] sm:$0xff] }
 0x343   :  { %v4969_v0 = vpop.f32.mrf.mxu1  ;;  %v2188_v14 = vadd.f32 %v2941_v27, %v2048_v53  ;;  %v2063_v46 = vadd.f32 %v2873_v20, %v1923_v23 }
 0x344   :  { %v4936_v25 = vpop.f32.mrf.mxu0 }
 0x345   :  { %5194 = vst [vmem:[#allocation38_spill] sm:$0xff] %v4936_v25  ;;  %v2178_v25 = vadd.f32 %v2935_v51, %v2038_v1  ;;  %v4981_v16 = vpop.f32.mrf.mxu1 }
 0x346   :  { %v4940_v55 = vpop.f32.mrf.mxu0 }
 0x347   :  { %v4995_v34 = vpop.f32.mrf.mxu1 }
 0x348   :  { %v4946_v24 = vpop.f32.mrf.mxu0 }
 0x349   :  { %v5005_v3 = vpop.f32.mrf.mxu1 }
 0x34a   :  { %v2317_v19 = vpop.f32.mrf.mxu0 }
 0x34b   :  { %v2318_v6 = vadd.f32 %v2317_v19, %v2178_v25  ;;  %v1778_v25 = vadd.f32 %v4796_v18, %v4914_v61 }
 0x34c   :  { %v3167_v37 = vpop.f32.mrf.mxu0 }
 0x34d   :  { %v2391_v1 = vmax.f32 %v2318_v6, 0.0  ;;  %v1918_v13 = vadd.f32 %v2793_v57, %v1778_v25  ;;  %v2799_v6 = vadd.f32 %v4806_v45, %v4804_v42  ;;  %v2950_v42 = vadd.f32 %v4899_v8, %v4893_v41  ;;  %v5195_v25 = vld [vmem:[#allocation24_spill] sm:$0xff]  ;;  %v5196_v57 = vld [vmem:[#allocation30_spill] sm:$0xff] }
 0x34e   :  { %v2322_v38 = vpop.f32.mrf.mxu0  ;;  %v2879_v27 = vadd.f32 %v5195_v25, %v4885_v33  ;;  %v2953_v8 = vadd.f32 %v5197_v60, %v5196_v57  ;;  %v5017_v33 = vpop.f32.mrf.mxu1  ;;  %v5210_v25 = vld [vmem:[#allocation9_spill] sm:$0xff] }
 0x34f   :  { %v2323_v28 = vadd.f32 %v2322_v38, %v2183_v30  ;;  %v2413_v56 = vmul.f32 %v4960_v5, %v2391_v1  ;;  %v2058_v49 = vadd.f32 %v2870_v7, %v1918_v13  ;;  %v1928_v1 = vadd.f32 %v2799_v6, %v1788_v40  ;;  %v5198_v7 = vld [vmem:[#allocation5_spill] sm:$0xff]  ;;  %v5204_v40 = vld [vmem:[#allocation36_spill] sm:$0xff] }
 0x350   :  { %v3170_v15 = vpop.f32.mrf.mxu0  ;;  %v1798_v48 = vadd.f32 %v5198_v7, %v4914_v61  ;;  %v5212_v60 = vld [vmem:[#allocation29_spill] sm:$0xff] }
 0x351   :  { %v2392_v29 = vmax.f32 %v2323_v28, 0.0  ;;  %v2429_v18 = vsel %vm2428_vm5, %v2413_v56, 0.0  ;;  %v2198_v37 = vadd.f32 %v2947_v47, %v2058_v49  ;;  %v2068_v39 = vadd.f32 %v2876_v9, %v1928_v1  ;;  %v5203_v49 = vld [vmem:[#allocation8_spill] sm:$0xff]  ;;  %v5207_v9 = vld [vmem:[#allocation27_spill] sm:$0xff] }
 0x352   :  { %v2327_v12 = vpop.f32.mrf.mxu0  ;;  %2430 = vadd.xlane.f32.xlu1 %v2429_v18  ;;  %v2203_v56 = vadd.f32 %v2950_v42, %v2063_v46  ;;  %v1933_v15 = vadd.f32 %v2802_v26, %v1793_v21  ;;  %v5200_v18 = vld [vmem:[#allocation4_spill] sm:$0xff]  ;;  %v1803_v20 = vadd.f32 %v5203_v49, %v4914_v61  ;;  %v2959_v26 = vadd.f32 %v4955_v52, %v4944_v54  ;;  %v5218_v49 = vld [vmem:[#allocation34_spill] sm:$0xff] }
 0x353   :  { %v2328_v32 = vadd.f32 %v2327_v12, %v2188_v14  ;;  %v2414_v51 = vmul.f32 %v4960_v5, %v2392_v29  ;;  %v5199_v14 = vld [vmem:[#allocation3_spill] sm:$0xff]  ;;  %v2208_v13 = vadd.f32 %v2953_v8, %v2068_v39 }
 0x354   :  { %v3173_v62 = vpop.f32.mrf.mxu0  ;;  %v2805_v11 = vadd.f32 %v5200_v18, %v5199_v14  ;;  %v2073_v31 = vadd.f32 %v2879_v27, %v1933_v15  ;;  %v5211_v27 = vld [vmem:[#allocation10_spill] sm:$0xff]  ;;  %v5213_v8 = vld [vmem:[#allocation31_spill] sm:$0xff] }
 0x355   :  { %v2393_v59 = vmax.f32 %v2328_v32, 0.0  ;;  %v2432_v17 = vsel %vm2428_vm5, %v2414_v51, 0.0  ;;  %v5201_v32 = vld [vmem:[#allocation25_spill] sm:$0xff]  ;;  %v5202_v51 = vld [vmem:[#allocation26_spill] sm:$0xff] }
 0x356   :  { %v2332_v19 = vpop.f32.mrf.mxu0  ;;  %2433 = vadd.xlane.f32.xlu0 %v2432_v17  ;;  %v2882_v10 = vadd.f32 %v5202_v51, %v5201_v32  ;;  %v1938_v17 = vadd.f32 %v2805_v11, %v1798_v48 }
 0x357   :  { %v2333_v63 = vadd.f32 %v2332_v19, %v2193_v44  ;;  %v2415_v58 = vmul.f32 %v4960_v5, %v2393_v59  ;;  %v2956_v19 = vadd.f32 %v4934_v4, %v5204_v40  ;;  %v5209_v4 = vld [vmem:[#allocation11_spill] sm:$0xff] }
 0x358   :  { %v3176_v22 = vpop.f32.mrf.mxu0 }
 0x359   :  { %v2394_v2 = vmax.f32 %v2333_v63, 0.0  ;;  %v2435_v53 = vsel %vm2428_vm5, %v2415_v58, 0.0  ;;  %v5205_v63 = vld [vmem:[#allocation6_spill] sm:$0xff]  ;;  %v5206_v58 = vld [vmem:[#allocation7_spill] sm:$0xff]  ;;  %v5208_v22 = vld [vmem:[#allocation28_spill] sm:$0xff] }
 0x35a   :  { %v2337_v30 = vpop.f32.mrf.mxu0  ;;  %2436 = vadd.xlane.f32.xlu0 %v2435_v53  ;;  %v2808_v6 = vadd.f32 %v5206_v58, %v5205_v63  ;;  %v2885_v46 = vadd.f32 %v5208_v22, %v5207_v9  ;;  %v2078_v53 = vadd.f32 %v2882_v10, %v1938_v17  ;;  %v5220_v58 = vld [vmem:[#allocation15_spill] sm:$0xff] }
 0x35b   :  { %v2338_v45 = vadd.f32 %v2337_v30, %v2198_v37  ;;  %v2416_v43 = vmul.f32 %v4960_v5, %v2394_v2  ;;  %v2967_v2 = vpop.f32.mrf.mxu1  ;;  %v2213_v30 = vadd.f32 %v2956_v19, %v2073_v31  ;;  %v5222_v22 = vld [vmem:[#allocation35_spill] sm:$0xff] }
 0x35c   :  { %v3179_v38 = vpop.f32.mrf.mxu0  ;;  %v1943_v42 = vadd.f32 %v2808_v6, %v1803_v20  ;;  %v2218_v7 = vadd.f32 %v2959_v26, %v2078_v53  ;;  %v5221_v6 = vld [vmem:[#allocation16_spill] sm:$0xff]  ;;  %v2968_v26 = vadd.f32 %v2967_v2, %v5017_v33  ;;  %v5228_v2 = vld [vmem:[#allocation23_spill] sm:$0xff] }
 0x35d   :  { %v2395_v28 = vmax.f32 %v2338_v45, 0.0  ;;  %v2438_v35 = vsel %vm2428_vm5, %v2416_v43, 0.0  ;;  %v1808_v43 = vadd.f32 %v5209_v4, %v4914_v61  ;;  %v2817_v9 = vadd.f32 %v5221_v6, %v5220_v58 }
 0x35e   :  { %v2342_v41 = vpop.f32.mrf.mxu0  ;;  %2439 = vadd.xlane.f32.xlu1 %v2438_v35  ;;  %v2969_v35 = vpop.f32.mrf.mxu1 }
 0x35f   :  { %v2343_v50 = vadd.f32 %v2342_v41, %v2203_v56  ;;  %v2417_v29 = vmul.f32 %v4960_v5, %v2395_v28  ;;  %v2811_v28 = vadd.f32 %v5211_v27, %v5210_v25  ;;  %v2083_v56 = vadd.f32 %v2885_v46, %v1943_v42  ;;  %v5223_v46 = vld [vmem:[#allocation37_spill] sm:$0xff]  ;;  %v5225_v25 = vld [vmem:[#allocation18_spill] sm:$0xff]  ;;  %v5226_v27 = vld [vmem:[#allocation19_spill] sm:$0xff] }
 0x360   :  { %v3182_v12 = vpop.f32.mrf.mxu0  ;;  %v2888_v41 = vadd.f32 %v5213_v8, %v5212_v60  ;;  %v2970_v32 = vpop.f32.mrf.mxu1  ;;  %v5227_v8 = vld [vmem:[#allocation38_spill] sm:$0xff] }
 0x361   :  { %v2396_v62 = vmax.f32 %v2343_v50, 0.0  ;;  %v2441_v44 = vsel %vm2428_vm5, %v2417_v29, 0.0  ;;  %v2962_v50 = vadd.f32 %v4981_v16, %v4969_v0  ;;  %v1948_v52 = vadd.f32 %v2811_v28, %v1808_v43  ;;  %v5214_v29 = vld [vmem:[#allocation14_spill] sm:$0xff]  ;;  %v5215_v12 = vld [vmem:[#allocation12_spill] sm:$0xff] }
 0x362   :  { %v2347_v59 = vpop.f32.mrf.mxu0  ;;  %2442 = vadd.xlane.f32.xlu0 %v2441_v44  ;;  %v1813_v14 = vadd.f32 %v5214_v29, %v4914_v61  ;;  %v5217_v44 = vld [vmem:[#allocation32_spill] sm:$0xff]  ;;  %v2972_v53 = vpop.f32.mrf.mxu1  ;;  %v2820_v28 = vadd.f32 %v5226_v27, %v5225_v25 }
 0x363   :  { %v2348_v23 = vadd.f32 %v2347_v59, %v2208_v13  ;;  %v2418_v47 = vmul.f32 %v4960_v5, %v2396_v62  ;;  %v5216_v13 = vld [vmem:[#allocation13_spill] sm:$0xff]  ;;  %v2223_v10 = vadd.f32 %v2962_v50, %v2083_v56  ;;  %v2088_v62 = vadd.f32 %v2888_v41, %v1948_v52 }
 0x364   :  { %v3185_v37 = vpop.f32.mrf.mxu0  ;;  %v2814_v31 = vadd.f32 %v5216_v13, %v5215_v12  ;;  %v2891_v20 = vadd.f32 %v5218_v49, %v5217_v44  ;;  %v5219_v59 = vld [vmem:[#allocation17_spill] sm:$0xff]  ;;  %v2897_v41 = vadd.f32 %v5227_v8, %v4930_v36  ;;  %v2971_v50 = vadd.f32 %v2970_v32, %v2969_v35 }
 0x365   :  { %v2397_v1 = vmax.f32 %v2348_v23, 0.0  ;;  %v2444_v21 = vsel %vm2428_vm5, %v2418_v47, 0.0  ;;  %v1818_v17 = vadd.f32 %v5219_v59, %v4914_v61  ;;  %v2965_v23 = vadd.f32 %v5005_v3, %v4995_v34  ;;  %v5224_v34 = vld [vmem:[#allocation20_spill] sm:$0xff] }
 0x366   :  { %v2352_v45 = vpop.f32.mrf.mxu0  ;;  %2445 = vadd.xlane.f32.xlu1 %v2444_v21  ;;  %v1953_v19 = vadd.f32 %v2814_v31, %v1813_v14  ;;  %v2894_v37 = vadd.f32 %v5223_v46, %v5222_v22  ;;  %v1823_v3 = vadd.f32 %v5224_v34, %v4914_v61  ;;  %v1828_v52 = vadd.f32 %v5228_v2, %v4914_v61 }
 0x367   :  { %v2353_v39 = vadd.f32 %v2352_v45, %v2213_v30  ;;  %v2419_v38 = vmul.f32 %v4960_v5, %v2397_v1  ;;  %v2228_v42 = vadd.f32 %v2965_v23, %v2088_v62  ;;  %v1958_v4 = vadd.f32 %v2817_v9, %v1818_v17 }
 0x368   :  { %v3188_v57 = vpop.f32.mrf.mxu0  ;;  %v2093_v30 = vadd.f32 %v2891_v20, %v1953_v19  ;;  %v1963_v33 = vadd.f32 %v2820_v28, %v1823_v3 }
 0x369   :  { %v2398_v15 = vmax.f32 %v2353_v39, 0.0  ;;  %v2447_v48 = vsel %vm2428_vm5, %v2419_v38, 0.0  ;;  %v2098_v56 = vadd.f32 %v2894_v37, %v1958_v4  ;;  %v2973_v57 = vpop.f32.mrf.mxu1 }
 0x36a   :  { %v2357_v54 = vpop.f32.mrf.mxu0  ;;  %2448 = vadd.xlane.f32.xlu0 %v2447_v48  ;;  %v2974_v61 = vadd.f32 %v2973_v57, %v2972_v53 }
 0x36b   :  { %v2358_v18 = vadd.f32 %v2357_v54, %v2218_v7  ;;  %v2420_v11 = vmul.f32 %v4960_v5, %v2398_v15  ;;  %v2233_v7 = vadd.f32 %v2968_v26, %v2093_v30  ;;  %v2975_v13 = vpop.f32.mrf.mxu1  ;;  %v2238_v36 = vadd.f32 %v2971_v50, %v2098_v56 }
 0x36c   :  { %v3191_v51 = vpop.f32.mrf.mxu0 }
 0x36d   :  { %v2399_v0 = vmax.f32 %v2358_v18, 0.0  ;;  %v2450_v16 = vsel %vm2428_vm5, %v2420_v11, 0.0  ;;  %v5229_v18 = vld [vmem:[#allocation21_spill] sm:$0xff]  ;;  %v5230_v11 = vld [vmem:[#allocation22_spill] sm:$0xff]  ;;  %v2103_v51 = vadd.f32 %v2897_v41, %v1963_v33 }
 0x36e   :  { %v2362_v40 = vpop.f32.mrf.mxu0  ;;  %2451 = vadd.xlane.f32.xlu1 %v2450_v16  ;;  %v2823_v12 = vadd.f32 %v5230_v11, %v5229_v18 }
 0x36f   :  { %v2363_v47 = vadd.f32 %v2362_v40, %v2223_v10  ;;  %v2421_v63 = vmul.f32 %v4960_v5, %v2399_v0  ;;  %v2900_v10 = vadd.f32 %v4946_v24, %v4940_v55  ;;  %v2976_v0 = vpop.f32.mrf.mxu1  ;;  %v2243_v40 = vadd.f32 %v2974_v61, %v2103_v51 }
 0x370   :  { %v3194_v1 = vpop.f32.mrf.mxu0  ;;  %v1968_v44 = vadd.f32 %v2823_v12, %v1828_v52  ;;  %v2977_v55 = vadd.f32 %v2976_v0, %v2975_v13 }
 0x371   :  { %v2400_v21 = vmax.f32 %v2363_v47, 0.0  ;;  %v2453_v45 = vsel %vm2428_vm5, %v2421_v63, 0.0 }
 0x372   :  { %v2367_v43 = vpop.f32.mrf.mxu0  ;;  %2454 = vadd.xlane.f32.xlu0 %v2453_v45  ;;  %v2108_v59 = vadd.f32 %v2900_v10, %v1968_v44  ;;  %v2622_v45 = vld [vmem:[#allocation2] ss:$0 sm:$0xff] }
 0x373   :  { %v2368_v39 = vadd.f32 %v2367_v43, %v2228_v42  ;;  %v2422_v38 = vmul.f32 %v4960_v5, %v2400_v21 }
 0x374   :  { %v3197_v60 = vpop.f32.mrf.mxu0  ;;  %v2248_v6 = vadd.f32 %v2977_v55, %v2108_v59 }
 0x375   :  { %v2401_v15 = vmax.f32 %v2368_v39, 0.0  ;;  %v2456_v48 = vsel %vm2428_vm5, %v2422_v38, 0.0 }
 0x376   :  { %v2372_v54 = vpop.f32.mrf.mxu0  ;;  %2457 = vadd.xlane.f32.xlu1 %v2456_v48 }
 0x377   :  { %v2373_v29 = vadd.f32 %v2372_v54, %v2233_v7  ;;  %v2423_v14 = vmul.f32 %v4960_v5, %v2401_v15 }
 0x378   :  { %v3200_v31 = vpop.f32.mrf.mxu0 }
 0x379   :  { %v2402_v35 = vmax.f32 %v2373_v29, 0.0  ;;  %v2459_v32 = vsel %vm2428_vm5, %v2423_v14, 0.0 }
 0x37a   :  { %v2377_v62 = vpop.f32.mrf.mxu0  ;;  %2460 = vadd.xlane.f32.xlu0 %v2459_v32 }
 0x37b   :  { %v2378_v49 = vadd.f32 %v2377_v62, %v2238_v36  ;;  %v2424_v20 = vmul.f32 %v4960_v5, %v2402_v35 }
 0x37c   :  { %v3203_v16 = vpop.f32.mrf.mxu0 }
 0x37d   :  { %v2403_v17 = vmax.f32 %v2378_v49, 0.0  ;;  %v2462_v19 = vsel %vm2428_vm5, %v2424_v20, 0.0 }
 0x37e   :  { %v2382_v23 = vpop.f32.mrf.mxu0  ;;  %2463 = vadd.xlane.f32.xlu1 %v2462_v19 }
 0x37f   :  { %v2383_v24 = vadd.f32 %v2382_v23, %v2243_v40  ;;  %v2425_v47 = vmul.f32 %v4960_v5, %v2403_v17 }
 0x380   :  { %v3206_v63 = vpop.f32.mrf.mxu0 }
 0x381   :  { %v2404_v58 = vmax.f32 %v2383_v24, 0.0  ;;  %v2465_v9 = vsel %vm2428_vm5, %v2425_v47, 0.0 }
 0x382   :  { %v2387_v22 = vpop.f32.mrf.mxu0  ;;  %2466 = vadd.xlane.f32.xlu0 %v2465_v9 }
 0x383   :  { %v2388_v46 = vadd.f32 %v2387_v22, %v2248_v6  ;;  %v2426_v37 = vmul.f32 %v4960_v5, %v2404_v58 }
 0x384   :  { %v3209_v53 = vpop.f32.mrf.mxu0 }
 0x385   :  { %v2405_v1 = vmax.f32 %v2388_v46, 0.0  ;;  %v2468_v30 = vsel %vm2428_vm5, %v2426_v37, 0.0 }
 0x386   :  { %2469 = vadd.xlane.f32.xlu1 %v2468_v30 }
 0x387   :  { %v2427_v21 = vmul.f32 %v4960_v5, %v2405_v1 }
 0x389   :  { %v2471_v42 = vsel %vm2428_vm5, %v2427_v21, 0.0 }
 0x38a   :  { %2472 = vadd.xlane.f32.xlu0 %v2471_v42 }
 0x3db   :  { %v2431_v4 = vpop.xlane.xlu1 %2430 }
 0x3dc   :  { %v2481_v43 = vadd.f32 %v2622_v45, %v2431_v4 }
 0x3de   :  { %2497 = vst.msk [vmem:[%s5158_s11] sm:$0xff] %vm2496_vm6, %v2481_v43 }
 0x3df   :  { %v2434_v34 = vpop.xlane.xlu0 %2433 }
 0x3e0   :  { %v2482_v3 = vadd.f32 %v2622_v45, %v2434_v34 }
 0x3e2   :  { %2498 = vst.msk [vmem:[%s5158_s11 + $0x8] sm:$0xff] %vm2496_vm6, %v2482_v3 }
 0x3e3   :  { %v2437_v5 = vpop.xlane.xlu0 %2436 }
 0x3e4   :  { %v2483_v26 = vadd.f32 %v2622_v45, %v2437_v5 }
 0x3e6   :  { %2499 = vst.msk [vmem:[%s5158_s11 + $0x10] sm:$0xff] %vm2496_vm6, %v2483_v26 }
 0x3e7   :  { %v2440_v39 = vpop.xlane.xlu1 %2439 }
 0x3e8   :  { %v2484_v38 = vadd.f32 %v2622_v45, %v2440_v39 }
 0x3ea   :  { %2500 = vst.msk [vmem:[%s5158_s11 + $0x18] sm:$0xff] %vm2496_vm6, %v2484_v38 }
 0x3eb   :  { %v2443_v25 = vpop.xlane.xlu0 %2442 }
 0x3ec   :  { %v2485_v27 = vadd.f32 %v2622_v45, %v2443_v25 }
 0x3ee   :  { %2501 = vst.msk [vmem:[%s5158_s11 + $0x20] sm:$0xff] %vm2496_vm6, %v2485_v27 }
 0x3ef   :  { %v2446_v28 = vpop.xlane.xlu1 %2445 }
 0x3f0   :  { %v2486_v56 = vadd.f32 %v2622_v45, %v2446_v28 }
 0x3f2   :  { %2502 = vst.msk [vmem:[%s5158_s11 + $0x28] sm:$0xff] %vm2496_vm6, %v2486_v56 }
 0x3f3   :  { %v2449_v57 = vpop.xlane.xlu0 %2448 }
 0x3f4   :  { %v2487_v60 = vadd.f32 %v2622_v45, %v2449_v57 }
 0x3f6   :  { %2503 = vst.msk [vmem:[%s5158_s11 + $0x30] sm:$0xff] %vm2496_vm6, %v2487_v60 }
 0x3f7   :  { %v2452_v8 = vpop.xlane.xlu1 %2451 }
 0x3f8   :  { %v2488_v41 = vadd.f32 %v2622_v45, %v2452_v8 }
 0x3fa   :  { %2504 = vst.msk [vmem:[%s5158_s11 + $0x38] sm:$0xff] %vm2496_vm6, %v2488_v41 }
 0x3fb   :  { %v2455_v15 = vpop.xlane.xlu0 %2454 }
 0x3fc   :  { %v2489_v7 = vadd.f32 %v2622_v45, %v2455_v15 }
 0x3fe   :  { %2505 = vst.msk [vmem:[%s5158_s11 + $0x40] sm:$0xff] %vm2496_vm6, %v2489_v7 }
 0x3ff   :  { %v2458_v48 = vpop.xlane.xlu1 %2457 }
 0x400   :  { %v2490_v50 = vadd.f32 %v2622_v45, %v2458_v48 }
 0x402   :  { %2506 = vst.msk [vmem:[%s5158_s11 + $0x48] sm:$0xff] %vm2496_vm6, %v2490_v50 }
 0x403   :  { %v2461_v54 = vpop.xlane.xlu0 %2460 }
 0x404   :  { %v2491_v33 = vadd.f32 %v2622_v45, %v2461_v54 }
 0x406   :  { %2507 = vst.msk [vmem:[%s5158_s11 + $0x50] sm:$0xff] %vm2496_vm6, %v2491_v33 }
 0x407   :  { %v2464_v2 = vpop.xlane.xlu1 %2463 }
 0x408   :  { %v2492_v52 = vadd.f32 %v2622_v45, %v2464_v2 }
 0x40a   :  { %2508 = vst.msk [vmem:[%s5158_s11 + $0x58] sm:$0xff] %vm2496_vm6, %v2492_v52 }
 0x40b   :  { %v2467_v29 = vpop.xlane.xlu0 %2466 }
 0x40c   :  { %v2493_v14 = vadd.f32 %v2622_v45, %v2467_v29 }
 0x40e   :  { %2509 = vst.msk [vmem:[%s5158_s11 + $0x60] sm:$0xff] %vm2496_vm6, %v2493_v14 }
 0x40f   :  { %v2470_v18 = vpop.xlane.xlu1 %2469 }
 0x410   :  { %v2494_v11 = vadd.f32 %v2622_v45, %v2470_v18 }
 0x412   :  { %2510 = vst.msk [vmem:[%s5158_s11 + $0x68] sm:$0xff] %vm2496_vm6, %v2494_v11 }
 0x413   :  { %v2473_v12 = vpop.xlane.xlu0 %2472 }
 0x414   :  { %v2495_v13 = vadd.f32 %v2622_v45, %v2473_v12 }
 0x416   :  { %2511 = vst.msk [vmem:[%s5158_s11 + $0x70] sm:$0xff] %vm2496_vm6, %v2495_v13 }

</bundles_post_ra>
